<compile_context>
chip_gen: v7x
topology: tpu7x:2x2x1
jax: 0.10.0
libtpu: 0.0.40
codegen_flags: <defaults>
</compile_context>

<pallas_src>
import math
import jax
import jax.numpy as jnp
from jax.experimental import pallas as pl
from jax.experimental.pallas import tpu as pltpu  # noqa: F401  (TPU backend assumed)

# ---------------- small ViT config (structure of ViT-Base/16, tiny sizes) -------------
IMG = 32          # image spatial size
PATCH = 16        # patch size (as in ViT-Base/16)
C = 3             # channels
HIDDEN = 32       # hidden size
HEADS = 2
HEAD_DIM = HIDDEN // HEADS
LAYERS = 2
INTER = 64        # MLP intermediate size
NUM_LABELS = 10
B = 2
N_PATCH = (IMG // PATCH) ** 2          # 4
SEQ = N_PATCH + 1                      # 5 (CLS + patches)
TOKENS = B * SEQ                       # 10
PATCH_DIM = C * PATCH * PATCH          # 768
EPS = 1e-12                            # HF ViT layer_norm_eps
LANE = 128                             # lane-dense pad width for the logits output
SEL_ROWS = 8                           # sublane-padded CLS-selection rows (full tile)


def _normalize(x):
    """LayerNorm without gamma/beta (those are folded into the following matmuls)."""
    mu = jnp.mean(x, axis=-1, keepdims=True)
    var = jnp.mean((x - mu) ** 2, axis=-1, keepdims=True)
    return (x - mu) * jax.lax.rsqrt(var + EPS)


# ------------------------------- fused Pallas kernel -----------------------------------
def vit_fused_kernel(patches_ref, pw_ref, tmpl_ref, mask_ref, sel_ref,
                     wqkv_ref, wo_ref, wi_ref, wo2_ref, bias_ref,
                     cw_ref, cb_ref, o_ref):
    # ---- patch embedding + CLS/pos template: x = patches_tok @ W_patch + template ----
    # patches_tok has zero rows at CLS positions; template carries cls_token+pos_emb at
    # CLS rows and pos_emb+patch_bias at patch rows (all precomputed in the wrapper).
    x = jnp.dot(patches_ref[...], pw_ref[...],
                preferred_element_type=jnp.float32) + tmpl_ref[...]

    mask = mask_ref[...]                       # (TOKENS, TOKENS) block-diag additive mask

    # ---- transformer encoder layers (static Python loop, stacked weights) ----
    for l in range(LAYERS):
        bias = bias_ref[l]                     # (4, LANE): [bqkv | bo | bi | bo2] rows
        bqkv = bias[0:1, 0:3 * HIDDEN]
        bo = bias[1:2, 0:HIDDEN]
        bi = bias[2:3, 0:INTER]
        bo2 = bias[3:4, 0:HIDDEN]

        # --- pre-LN multi-head self-attention (LN1 gamma/beta + 1/sqrt(d) pre-folded) ---
        qkv = jnp.dot(_normalize(x), wqkv_ref[l],
                      preferred_element_type=jnp.float32) + bqkv        # (TOKENS, 3H)

        ctx_heads = []
        for hh in range(HEADS):
            qh = qkv[:, hh * HEAD_DIM:(hh + 1) * HEAD_DIM]
            kh = qkv[:, HIDDEN + hh * HEAD_DIM:HIDDEN + (hh + 1) * HEAD_DIM]
            vh = qkv[:, 2 * HIDDEN + hh * HEAD_DIM:2 * HIDDEN + (hh + 1) * HEAD_DIM]
            # scores over all tokens; cross-image pairs masked out additively
            s = jax.lax.dot_general(qh, kh, (((1,), (1,)), ((), ())),
                                    preferred_element_type=jnp.float32) + mask
            s = s - jnp.max(s, axis=-1, keepdims=True)
            p = jnp.exp(s)
            p = p * pl.reciprocal(jnp.sum(p, axis=-1, keepdims=True), approx=True)
            ctx_heads.append(jnp.dot(p, vh, preferred_element_type=jnp.float32))
        ctx = jnp.concatenate(ctx_heads, axis=-1)                        # (TOKENS, HIDDEN)

        x = x + jnp.dot(ctx, wo_ref[l], preferred_element_type=jnp.float32) + bo

        # --- pre-LN GELU MLP (LN2 gamma/beta pre-folded into wi/bi) ---
        inter = jnp.dot(_normalize(x), wi_ref[l],
                        preferred_element_type=jnp.float32) + bi
        # TODO(synk): HF ViT uses exact (erf) GELU; tanh approximation used here for
        # robust Mosaic lowering.
        inter = jax.nn.gelu(inter, approximate=True)
        x = x + jnp.dot(inter, wo2_ref[l], preferred_element_type=jnp.float32) + bo2

    # ---- CLS-row selection via one-hot MXU matmul; final LN folded into classifier ----
    cls_x = jnp.dot(sel_ref[...], x, preferred_element_type=jnp.float32)  # (8, HIDDEN)
    o_ref[...] = jnp.dot(_normalize(cls_x), cw_ref[...],
                         preferred_element_type=jnp.float32) + cb_ref[...]  # (8, 128)


# ---------------------------------- parameter init --------------------------------------
def init_params(key):
    def nrm(k, shape, scale=0.02):
        return (jax.random.normal(k, shape, jnp.float32) * scale).astype(jnp.float32)

    keys = iter(jax.random.split(key, 8 + LAYERS * 8))
    params = {
        "patch_w": nrm(next(keys), (PATCH_DIM, HIDDEN)),
        "patch_b": jnp.zeros((1, HIDDEN), jnp.float32),
        "cls_token": nrm(next(keys), (1, 1, HIDDEN)),
        "pos_emb": nrm(next(keys), (1, SEQ, HIDDEN)),
        "final_lnw": jnp.ones((1, HIDDEN), jnp.float32),
        "final_lnb": jnp.zeros((1, HIDDEN), jnp.float32),
        "cls_w": nrm(next(keys), (HIDDEN, NUM_LABELS)),
        "cls_b": jnp.zeros((1, NUM_LABELS), jnp.float32),
        "layers": [],
    }
    for _ in range(LAYERS):
        lp = {
            "ln1w": jnp.ones((1, HIDDEN), jnp.float32),
            "ln1b": jnp.zeros((1, HIDDEN), jnp.float32),
            "wq": nrm(next(keys), (HIDDEN, HIDDEN)),
            "bq": jnp.zeros((1, HIDDEN), jnp.float32),
            "wk": nrm(next(keys), (HIDDEN, HIDDEN)),
            "bk": jnp.zeros((1, HIDDEN), jnp.float32),
            "wv": nrm(next(keys), (HIDDEN, HIDDEN)),
            "bv": jnp.zeros((1, HIDDEN), jnp.float32),
            "wo": nrm(next(keys), (HIDDEN, HIDDEN)),
            "bo": jnp.zeros((1, HIDDEN), jnp.float32),
            "ln2w": jnp.ones((1, HIDDEN), jnp.float32),
            "ln2b": jnp.zeros((1, HIDDEN), jnp.float32),
            "wi": nrm(next(keys), (HIDDEN, INTER)),
            "bi": jnp.zeros((1, INTER), jnp.float32),
            "wo2": nrm(next(keys), (INTER, HIDDEN)),
            "bo2": jnp.zeros((1, HIDDEN), jnp.float32),
        }
        params["layers"].append(lp)
    return params


# ----------------------------- one-time parameter prep ----------------------------------
def prepare_kernel_params(params):
    """One-time prep (hoisted out of the per-call path): stack per-layer weights, fuse
    QKV, fold the attention scale + all LayerNorm gammas/betas into adjacent matmuls,
    build the CLS/pos template, batch mask, CLS selector, and lane-padded classifier."""
    scale = 1.0 / math.sqrt(HEAD_DIM)

    # patch embedding in bf16 (single MXU pass for the only K=768 matmul; f32 accumulate)
    patch_w = params["patch_w"].astype(jnp.bfloat16)

    # token template: CLS rows get cls_token + pos_emb[0]; patch rows pos_emb[1:]+patch_b
    cls_row = params["cls_token"][0, 0] + params["pos_emb"][0, 0]              # (H,)
    patch_rows = params["pos_emb"][0, 1:] + params["patch_b"][0]               # (N_PATCH,H)
    per_image = jnp.concatenate([cls_row[None, :], patch_rows], axis=0)        # (SEQ, H)
    template = jnp.tile(per_image, (B, 1))                                     # (TOKENS, H)

    # block-diagonal additive attention mask (no cross-image attention)
    batch_id = jnp.arange(TOKENS) // SEQ
    mask = jnp.where(batch_id[:, None] == batch_id[None, :],
                     0.0, -1e9).astype(jnp.float32)                            # (T, T)

    # one-hot CLS-row selector, sublane-padded to 8 rows -> full-tile output store
    sel = jnp.zeros((SEL_ROWS, TOKENS), jnp.float32)
    sel = sel.at[jnp.arange(B), jnp.arange(B) * SEQ].set(1.0)

    def pad_lane(v):
        return jnp.pad(v, ((0, 0), (0, LANE - v.shape[1])))

    wqkv_l, wo_l, wi_l, wo2_l, bias_l = [], [], [], [], []
    for lp in params["layers"]:
        # fused QKV with 1/sqrt(head_dim) folded into Q and LN1 gamma/beta folded in
        wqkv = jnp.concatenate([lp["wq"] * scale, lp["wk"], lp["wv"]], axis=1)  # (H, 3H)
        bqkv = jnp.concatenate([lp["bq"] * scale, lp["bk"], lp["bv"]], axis=1)  # (1, 3H)
        wqkv_f = lp["ln1w"][0][:, None] * wqkv
        bqkv_f = lp["ln1b"] @ wqkv + bqkv
        # LN2 gamma/beta folded into the MLP up-projection
        wi_f = lp["ln2w"][0][:, None] * lp["wi"]
        bi_f = lp["ln2b"] @ lp["wi"] + lp["bi"]

        wqkv_l.append(wqkv_f)
        wo_l.append(lp["wo"])
        wi_l.append(wi_f)
        wo2_l.append(lp["wo2"])
        # lane-aligned bias slab: row0=bqkv(96), row1=bo(32), row2=bi(64), row3=bo2(32)
        bias_l.append(jnp.concatenate(
            [pad_lane(bqkv_f), pad_lane(lp["bo"]), pad_lane(bi_f), pad_lane(lp["bo2"])],
            axis=0))                                                            # (4, LANE)

    # final LN folded into the lane-padded classifier
    cls_w_pad = jnp.pad(params["cls_w"], ((0, 0), (0, LANE - NUM_LABELS)))      # (H, 128)
    cls_b_pad = jnp.pad(params["cls_b"], ((0, 0), (0, LANE - NUM_LABELS)))      # (1, 128)
    cls_w_f = params["final_lnw"][0][:, None] * cls_w_pad
    cls_b_f = params["final_lnb"] @ cls_w_pad + cls_b_pad

    return {
        "patch_w": patch_w,
        "template": template,
        "mask": mask,
        "sel": sel,
        "wqkv": jnp.stack(wqkv_l, axis=0),       # (L, H, 3H)
        "wo": jnp.stack(wo_l, axis=0),           # (L, H, H)
        "wi": jnp.stack(wi_l, axis=0),           # (L, H, INTER)
        "wo2": jnp.stack(wo2_l, axis=0),         # (L, INTER, H)
        "bias": jnp.stack(bias_l, axis=0),       # (L, 4, LANE)
        "cls_w": cls_w_f,                        # (H, LANE)
        "cls_b": cls_b_f,                        # (1, LANE)
    }


# ---------------------------------- jitted forward ---------------------------------------
def _build_patch_tokens(x):
    """NCHW image -> (TOKENS, PATCH_DIM) with zero rows at CLS positions (bf16)."""
    b, c, h, w = x.shape
    nh, nw = h // PATCH, w // PATCH
    p = x.reshape(b, c, nh, PATCH, nw, PATCH).transpose(0, 2, 4, 1, 3, 5)
    p = p.reshape(b, nh * nw, c * PATCH * PATCH)                     # (B, N_PATCH, PD)
    zeros_cls = jnp.zeros((b, 1, c * PATCH * PATCH), p.dtype)
    tok = jnp.concatenate([zeros_cls, p], axis=1)                    # (B, SEQ, PD)
    return tok.reshape(b * SEQ, c * PATCH * PATCH).astype(jnp.bfloat16)


@jax.jit
def _forward_jit(samples, kp):
    patches_tok = _build_patch_tokens(samples)
    logits_pad = pl.pallas_call(
        vit_fused_kernel,
        out_shape=jax.ShapeDtypeStruct((SEL_ROWS, LANE), jnp.float32),
    )(patches_tok, kp["patch_w"], kp["template"], kp["mask"], kp["sel"],
      kp["wqkv"], kp["wo"], kp["wi"], kp["wo2"], kp["bias"],
      kp["cls_w"], kp["cls_b"])
    return logits_pad[:B, :NUM_LABELS]


def vit_base16_forward(samples, kernel_params):
    """ViTBase16.forward: returns {'logits': ...}.

    Note: the PyTorch module calls self.model(samples) twice (once discarded) and hits a
    breakpoint(); both have no computational effect and are collapsed to one evaluation.
    """
    return {"logits": _forward_jit(samples, kernel_params)}


if __name__ == "__main__":
    key = jax.random.PRNGKey(0)
    k_x, k_p = jax.random.split(key)
    samples = jax.random.normal(k_x, (B, C, IMG, IMG), jnp.float32)   # NCHW, like PyTorch
    params = init_params(k_p)
    kernel_params = prepare_kernel_params(params)   # one-time prep, hoisted out of forward

    pred = vit_base16_forward(samples, kernel_params)
    logits = jax.block_until_ready(pred["logits"])
    assert logits.shape == (B, NUM_LABELS)
    assert bool(jnp.all(jnp.isfinite(logits)))
    print("KERNEL_OK")
</pallas_src>

<mosaic_0001>
module attributes {stable_mosaic.version = 11 : i64} {
  func.func @vit_fused_kernel(%arg0: memref<10x768xbf16, #tpu.memory_space<vmem>>, %arg1: memref<768x32xbf16, #tpu.memory_space<vmem>>, %arg2: memref<10x32xf32, #tpu.memory_space<vmem>>, %arg3: memref<10x10xf32, #tpu.memory_space<vmem>>, %arg4: memref<8x10xf32, #tpu.memory_space<vmem>>, %arg5: memref<2x32x96xf32, #tpu.memory_space<vmem>>, %arg6: memref<2x32x32xf32, #tpu.memory_space<vmem>>, %arg7: memref<2x32x64xf32, #tpu.memory_space<vmem>>, %arg8: memref<2x64x32xf32, #tpu.memory_space<vmem>>, %arg9: memref<2x4x128xf32, #tpu.memory_space<vmem>>, %arg10: memref<32x128xf32, #tpu.memory_space<vmem>>, %arg11: memref<1x128xf32, #tpu.memory_space<vmem>>, %arg12: memref<8x128xf32, #tpu.memory_space<vmem>>) attributes {dimension_semantics = [], scalar_prefetch = 0 : i64, scratch_operands = 0 : i64, tpu.core_type = #tpu.core_type<tc>} {
    %c0 = arith.constant 0 : index
    %c0_0 = arith.constant 0 : index
    %0 = vector.load %arg0[%c0, %c0_0] : memref<10x768xbf16, #tpu.memory_space<vmem>>, vector<10x768xbf16>
    %c0_1 = arith.constant 0 : index
    %c0_2 = arith.constant 0 : index
    %1 = vector.load %arg1[%c0_1, %c0_2] : memref<768x32xbf16, #tpu.memory_space<vmem>>, vector<768x32xbf16>
    %cst = arith.constant dense<0.000000e+00> : vector<10x32xf32>
    %2 = tpu.matmul %0, %1, %cst {dimension_numbers = #tpu.dot_dimension_numbers<[1], [0], [0], [1], [0, 0, 1, 1], [], []>} : vector<10x768xbf16>, vector<768x32xbf16>, vector<10x32xf32> -> vector<10x32xf32>
    %c0_3 = arith.constant 0 : index
    %c0_4 = arith.constant 0 : index
    %3 = vector.load %arg2[%c0_3, %c0_4] : memref<10x32xf32, #tpu.memory_space<vmem>>, vector<10x32xf32>
    %4 = arith.addf %2, %3 : vector<10x32xf32>
    %c0_5 = arith.constant 0 : index
    %c0_6 = arith.constant 0 : index
    %5 = vector.load %arg3[%c0_5, %c0_6] : memref<10x10xf32, #tpu.memory_space<vmem>>, vector<10x10xf32>
    %c0_7 = arith.constant 0 : index
    %c0_8 = arith.constant 0 : index
    %c0_9 = arith.constant 0 : index
    %6 = vector.load %arg9[%c0_7, %c0_8, %c0_9] : memref<2x4x128xf32, #tpu.memory_space<vmem>>, vector<1x4x128xf32>
    %7 = vector.shape_cast %6 : vector<1x4x128xf32> to vector<4x128xf32>
    %8 = vector.extract_strided_slice %7 {offsets = [0, 0], sizes = [1, 96], strides = [1, 1]} : vector<4x128xf32> to vector<1x96xf32>
    %9 = vector.extract_strided_slice %7 {offsets = [1, 0], sizes = [1, 32], strides = [1, 1]} : vector<4x128xf32> to vector<1x32xf32>
    %10 = vector.extract_strided_slice %7 {offsets = [2, 0], sizes = [1, 64], strides = [1, 1]} : vector<4x128xf32> to vector<1x64xf32>
    %11 = vector.extract_strided_slice %7 {offsets = [3, 0], sizes = [1, 32], strides = [1, 1]} : vector<4x128xf32> to vector<1x32xf32>
    %cst_10 = arith.constant dense<0.000000e+00> : vector<10xf32>
    %12 = vector.multi_reduction <add>, %4, %cst_10 [1] : vector<10x32xf32> to vector<10xf32>
    %13 = vector.shape_cast %12 : vector<10xf32> to vector<10x1xf32>
    %cst_11 = arith.constant 3.200000e+01 : f32
    %14 = vector.broadcast %cst_11 : f32 to vector<10x1xf32>
    %15 = arith.divf %13, %14 : vector<10x1xf32>
    %16 = vector.broadcast %15 : vector<10x1xf32> to vector<10x32xf32>
    %17 = arith.subf %4, %16 : vector<10x32xf32>
    %18 = arith.mulf %17, %17 : vector<10x32xf32>
    %cst_12 = arith.constant dense<0.000000e+00> : vector<10xf32>
    %19 = vector.multi_reduction <add>, %18, %cst_12 [1] : vector<10x32xf32> to vector<10xf32>
    %20 = vector.shape_cast %19 : vector<10xf32> to vector<10x1xf32>
    %cst_13 = arith.constant 3.200000e+01 : f32
    %21 = vector.broadcast %cst_13 : f32 to vector<10x1xf32>
    %22 = arith.divf %20, %21 : vector<10x1xf32>
    %23 = vector.broadcast %15 : vector<10x1xf32> to vector<10x32xf32>
    %24 = arith.subf %4, %23 : vector<10x32xf32>
    %cst_14 = arith.constant 9.99999996E-13 : f32
    %25 = vector.broadcast %cst_14 : f32 to vector<10x1xf32>
    %26 = arith.addf %22, %25 : vector<10x1xf32>
    %27 = math.rsqrt %26 : vector<10x1xf32>
    %28 = vector.broadcast %27 : vector<10x1xf32> to vector<10x32xf32>
    %29 = arith.mulf %24, %28 : vector<10x32xf32>
    %c0_15 = arith.constant 0 : index
    %c0_16 = arith.constant 0 : index
    %c0_17 = arith.constant 0 : index
    %30 = vector.load %arg5[%c0_15, %c0_16, %c0_17] : memref<2x32x96xf32, #tpu.memory_space<vmem>>, vector<1x32x96xf32>
    %31 = vector.shape_cast %30 : vector<1x32x96xf32> to vector<32x96xf32>
    %cst_18 = arith.constant dense<0.000000e+00> : vector<10x96xf32>
    %32 = tpu.matmul %29, %31, %cst_18 {dimension_numbers = #tpu.dot_dimension_numbers<[1], [0], [0], [1], [0, 0, 1, 1], [], []>} : vector<10x32xf32>, vector<32x96xf32>, vector<10x96xf32> -> vector<10x96xf32>
    %33 = vector.broadcast %8 : vector<1x96xf32> to vector<10x96xf32>
    %34 = arith.addf %32, %33 : vector<10x96xf32>
    %35 = vector.extract_strided_slice %34 {offsets = [0, 0], sizes = [10, 16], strides = [1, 1]} : vector<10x96xf32> to vector<10x16xf32>
    %36 = vector.extract_strided_slice %34 {offsets = [0, 32], sizes = [10, 16], strides = [1, 1]} : vector<10x96xf32> to vector<10x16xf32>
    %37 = vector.extract_strided_slice %34 {offsets = [0, 64], sizes = [10, 16], strides = [1, 1]} : vector<10x96xf32> to vector<10x16xf32>
    %cst_19 = arith.constant dense<0.000000e+00> : vector<10x10xf32>
    %38 = tpu.matmul %35, %36, %cst_19 {dimension_numbers = #tpu.dot_dimension_numbers<[1], [1], [0], [0], [0, 0, 1, 0], [], []>} : vector<10x16xf32>, vector<10x16xf32>, vector<10x10xf32> -> vector<10x10xf32>
    %39 = arith.addf %38, %5 : vector<10x10xf32>
    %cst_20 = arith.constant dense<0xFF800000> : vector<10xf32>
    %40 = vector.multi_reduction <maximumf>, %39, %cst_20 [1] : vector<10x10xf32> to vector<10xf32>
    %41 = vector.shape_cast %40 : vector<10xf32> to vector<10x1xf32>
    %42 = vector.broadcast %41 : vector<10x1xf32> to vector<10x10xf32>
    %43 = arith.subf %39, %42 : vector<10x10xf32>
    %44 = math.exp %43 : vector<10x10xf32>
    %cst_21 = arith.constant dense<0.000000e+00> : vector<10xf32>
    %45 = vector.multi_reduction <add>, %44, %cst_21 [1] : vector<10x10xf32> to vector<10xf32>
    %46 = vector.shape_cast %45 : vector<10xf32> to vector<10x1xf32>
    %47 = tpu.reciprocal %46 {approx = true} : vector<10x1xf32> -> vector<10x1xf32>
    %48 = vector.broadcast %47 : vector<10x1xf32> to vector<10x10xf32>
    %49 = arith.mulf %44, %48 : vector<10x10xf32>
    %cst_22 = arith.constant dense<0.000000e+00> : vector<10x16xf32>
    %50 = tpu.matmul %49, %37, %cst_22 {dimension_numbers = #tpu.dot_dimension_numbers<[1], [0], [0], [1], [0, 0, 1, 1], [], []>} : vector<10x10xf32>, vector<10x16xf32>, vector<10x16xf32> -> vector<10x16xf32>
    %51 = vector.extract_strided_slice %34 {offsets = [0, 16], sizes = [10, 16], strides = [1, 1]} : vector<10x96xf32> to vector<10x16xf32>
    %52 = vector.extract_strided_slice %34 {offsets = [0, 48], sizes = [10, 16], strides = [1, 1]} : vector<10x96xf32> to vector<10x16xf32>
    %53 = vector.extract_strided_slice %34 {offsets = [0, 80], sizes = [10, 16], strides = [1, 1]} : vector<10x96xf32> to vector<10x16xf32>
    %cst_23 = arith.constant dense<0.000000e+00> : vector<10x10xf32>
    %54 = tpu.matmul %51, %52, %cst_23 {dimension_numbers = #tpu.dot_dimension_numbers<[1], [1], [0], [0], [0, 0, 1, 0], [], []>} : vector<10x16xf32>, vector<10x16xf32>, vector<10x10xf32> -> vector<10x10xf32>
    %55 = arith.addf %54, %5 : vector<10x10xf32>
    %cst_24 = arith.constant dense<0xFF800000> : vector<10xf32>
    %56 = vector.multi_reduction <maximumf>, %55, %cst_24 [1] : vector<10x10xf32> to vector<10xf32>
    %57 = vector.shape_cast %56 : vector<10xf32> to vector<10x1xf32>
    %58 = vector.broadcast %57 : vector<10x1xf32> to vector<10x10xf32>
    %59 = arith.subf %55, %58 : vector<10x10xf32>
    %60 = math.exp %59 : vector<10x10xf32>
    %cst_25 = arith.constant dense<0.000000e+00> : vector<10xf32>
    %61 = vector.multi_reduction <add>, %60, %cst_25 [1] : vector<10x10xf32> to vector<10xf32>
    %62 = vector.shape_cast %61 : vector<10xf32> to vector<10x1xf32>
    %63 = tpu.reciprocal %62 {approx = true} : vector<10x1xf32> -> vector<10x1xf32>
    %64 = vector.broadcast %63 : vector<10x1xf32> to vector<10x10xf32>
    %65 = arith.mulf %60, %64 : vector<10x10xf32>
    %cst_26 = arith.constant dense<0.000000e+00> : vector<10x16xf32>
    %66 = tpu.matmul %65, %53, %cst_26 {dimension_numbers = #tpu.dot_dimension_numbers<[1], [0], [0], [1], [0, 0, 1, 1], [], []>} : vector<10x10xf32>, vector<10x16xf32>, vector<10x16xf32> -> vector<10x16xf32>
    %67 = tpu.concatenate %50, %66 in 1 : vector<10x16xf32>, vector<10x16xf32> -> vector<10x32xf32>
    %c0_27 = arith.constant 0 : index
    %c0_28 = arith.constant 0 : index
    %c0_29 = arith.constant 0 : index
    %68 = vector.load %arg6[%c0_27, %c0_28, %c0_29] : memref<2x32x32xf32, #tpu.memory_space<vmem>>, vector<1x32x32xf32>
    %69 = vector.shape_cast %68 : vector<1x32x32xf32> to vector<32x32xf32>
    %cst_30 = arith.constant dense<0.000000e+00> : vector<10x32xf32>
    %70 = tpu.matmul %67, %69, %cst_30 {dimension_numbers = #tpu.dot_dimension_numbers<[1], [0], [0], [1], [0, 0, 1, 1], [], []>} : vector<10x32xf32>, vector<32x32xf32>, vector<10x32xf32> -> vector<10x32xf32>
    %71 = arith.addf %4, %70 : vector<10x32xf32>
    %72 = vector.broadcast %9 : vector<1x32xf32> to vector<10x32xf32>
    %73 = arith.addf %71, %72 : vector<10x32xf32>
    %cst_31 = arith.constant dense<0.000000e+00> : vector<10xf32>
    %74 = vector.multi_reduction <add>, %73, %cst_31 [1] : vector<10x32xf32> to vector<10xf32>
    %75 = vector.shape_cast %74 : vector<10xf32> to vector<10x1xf32>
    %cst_32 = arith.constant 3.200000e+01 : f32
    %76 = vector.broadcast %cst_32 : f32 to vector<10x1xf32>
    %77 = arith.divf %75, %76 : vector<10x1xf32>
    %78 = vector.broadcast %77 : vector<10x1xf32> to vector<10x32xf32>
    %79 = arith.subf %73, %78 : vector<10x32xf32>
    %80 = arith.mulf %79, %79 : vector<10x32xf32>
    %cst_33 = arith.constant dense<0.000000e+00> : vector<10xf32>
    %81 = vector.multi_reduction <add>, %80, %cst_33 [1] : vector<10x32xf32> to vector<10xf32>
    %82 = vector.shape_cast %81 : vector<10xf32> to vector<10x1xf32>
    %cst_34 = arith.constant 3.200000e+01 : f32
    %83 = vector.broadcast %cst_34 : f32 to vector<10x1xf32>
    %84 = arith.divf %82, %83 : vector<10x1xf32>
    %85 = vector.broadcast %77 : vector<10x1xf32> to vector<10x32xf32>
    %86 = arith.subf %73, %85 : vector<10x32xf32>
    %cst_35 = arith.constant 9.99999996E-13 : f32
    %87 = vector.broadcast %cst_35 : f32 to vector<10x1xf32>
    %88 = arith.addf %84, %87 : vector<10x1xf32>
    %89 = math.rsqrt %88 : vector<10x1xf32>
    %90 = vector.broadcast %89 : vector<10x1xf32> to vector<10x32xf32>
    %91 = arith.mulf %86, %90 : vector<10x32xf32>
    %c0_36 = arith.constant 0 : index
    %c0_37 = arith.constant 0 : index
    %c0_38 = arith.constant 0 : index
    %92 = vector.load %arg7[%c0_36, %c0_37, %c0_38] : memref<2x32x64xf32, #tpu.memory_space<vmem>>, vector<1x32x64xf32>
    %93 = vector.shape_cast %92 : vector<1x32x64xf32> to vector<32x64xf32>
    %cst_39 = arith.constant dense<0.000000e+00> : vector<10x64xf32>
    %94 = tpu.matmul %91, %93, %cst_39 {dimension_numbers = #tpu.dot_dimension_numbers<[1], [0], [0], [1], [0, 0, 1, 1], [], []>} : vector<10x32xf32>, vector<32x64xf32>, vector<10x64xf32> -> vector<10x64xf32>
    %95 = vector.broadcast %10 : vector<1x64xf32> to vector<10x64xf32>
    %96 = arith.addf %94, %95 : vector<10x64xf32>
    %97 = arith.mulf %96, %96 : vector<10x64xf32>
    %98 = arith.mulf %96, %97 : vector<10x64xf32>
    %cst_40 = arith.constant 4.471500e-02 : f32
    %99 = vector.broadcast %cst_40 : f32 to vector<10x64xf32>
    %100 = arith.mulf %99, %98 : vector<10x64xf32>
    %101 = arith.addf %96, %100 : vector<10x64xf32>
    %cst_41 = arith.constant 0.797884583 : f32
    %102 = vector.broadcast %cst_41 : f32 to vector<10x64xf32>
    %103 = arith.mulf %102, %101 : vector<10x64xf32>
    %104 = math.tanh %103 : vector<10x64xf32>
    %cst_42 = arith.constant 1.000000e+00 : f32
    %105 = vector.broadcast %cst_42 : f32 to vector<10x64xf32>
    %106 = arith.addf %105, %104 : vector<10x64xf32>
    %cst_43 = arith.constant 5.000000e-01 : f32
    %107 = vector.broadcast %cst_43 : f32 to vector<10x64xf32>
    %108 = arith.mulf %107, %106 : vector<10x64xf32>
    %109 = arith.mulf %96, %108 : vector<10x64xf32>
    %c0_44 = arith.constant 0 : index
    %c0_45 = arith.constant 0 : index
    %c0_46 = arith.constant 0 : index
    %110 = vector.load %arg8[%c0_44, %c0_45, %c0_46] : memref<2x64x32xf32, #tpu.memory_space<vmem>>, vector<1x64x32xf32>
    %111 = vector.shape_cast %110 : vector<1x64x32xf32> to vector<64x32xf32>
    %cst_47 = arith.constant dense<0.000000e+00> : vector<10x32xf32>
    %112 = tpu.matmul %109, %111, %cst_47 {dimension_numbers = #tpu.dot_dimension_numbers<[1], [0], [0], [1], [0, 0, 1, 1], [], []>} : vector<10x64xf32>, vector<64x32xf32>, vector<10x32xf32> -> vector<10x32xf32>
    %113 = arith.addf %73, %112 : vector<10x32xf32>
    %114 = vector.broadcast %11 : vector<1x32xf32> to vector<10x32xf32>
    %115 = arith.addf %113, %114 : vector<10x32xf32>
    %c1 = arith.constant 1 : index
    %c0_48 = arith.constant 0 : index
    %c0_49 = arith.constant 0 : index
    %116 = vector.load %arg9[%c1, %c0_48, %c0_49] : memref<2x4x128xf32, #tpu.memory_space<vmem>>, vector<1x4x128xf32>
    %117 = vector.shape_cast %116 : vector<1x4x128xf32> to vector<4x128xf32>
    %118 = vector.extract_strided_slice %117 {offsets = [0, 0], sizes = [1, 96], strides = [1, 1]} : vector<4x128xf32> to vector<1x96xf32>
    %119 = vector.extract_strided_slice %117 {offsets = [1, 0], sizes = [1, 32], strides = [1, 1]} : vector<4x128xf32> to vector<1x32xf32>
    %120 = vector.extract_strided_slice %117 {offsets = [2, 0], sizes = [1, 64], strides = [1, 1]} : vector<4x128xf32> to vector<1x64xf32>
    %121 = vector.extract_strided_slice %117 {offsets = [3, 0], sizes = [1, 32], strides = [1, 1]} : vector<4x128xf32> to vector<1x32xf32>
    %cst_50 = arith.constant dense<0.000000e+00> : vector<10xf32>
    %122 = vector.multi_reduction <add>, %115, %cst_50 [1] : vector<10x32xf32> to vector<10xf32>
    %123 = vector.shape_cast %122 : vector<10xf32> to vector<10x1xf32>
    %cst_51 = arith.constant 3.200000e+01 : f32
    %124 = vector.broadcast %cst_51 : f32 to vector<10x1xf32>
    %125 = arith.divf %123, %124 : vector<10x1xf32>
    %126 = vector.broadcast %125 : vector<10x1xf32> to vector<10x32xf32>
    %127 = arith.subf %115, %126 : vector<10x32xf32>
    %128 = arith.mulf %127, %127 : vector<10x32xf32>
    %cst_52 = arith.constant dense<0.000000e+00> : vector<10xf32>
    %129 = vector.multi_reduction <add>, %128, %cst_52 [1] : vector<10x32xf32> to vector<10xf32>
    %130 = vector.shape_cast %129 : vector<10xf32> to vector<10x1xf32>
    %cst_53 = arith.constant 3.200000e+01 : f32
    %131 = vector.broadcast %cst_53 : f32 to vector<10x1xf32>
    %132 = arith.divf %130, %131 : vector<10x1xf32>
    %133 = vector.broadcast %125 : vector<10x1xf32> to vector<10x32xf32>
    %134 = arith.subf %115, %133 : vector<10x32xf32>
    %cst_54 = arith.constant 9.99999996E-13 : f32
    %135 = vector.broadcast %cst_54 : f32 to vector<10x1xf32>
    %136 = arith.addf %132, %135 : vector<10x1xf32>
    %137 = math.rsqrt %136 : vector<10x1xf32>
    %138 = vector.broadcast %137 : vector<10x1xf32> to vector<10x32xf32>
    %139 = arith.mulf %134, %138 : vector<10x32xf32>
    %c1_55 = arith.constant 1 : index
    %c0_56 = arith.constant 0 : index
    %c0_57 = arith.constant 0 : index
    %140 = vector.load %arg5[%c1_55, %c0_56, %c0_57] : memref<2x32x96xf32, #tpu.memory_space<vmem>>, vector<1x32x96xf32>
    %141 = vector.shape_cast %140 : vector<1x32x96xf32> to vector<32x96xf32>
    %cst_58 = arith.constant dense<0.000000e+00> : vector<10x96xf32>
    %142 = tpu.matmul %139, %141, %cst_58 {dimension_numbers = #tpu.dot_dimension_numbers<[1], [0], [0], [1], [0, 0, 1, 1], [], []>} : vector<10x32xf32>, vector<32x96xf32>, vector<10x96xf32> -> vector<10x96xf32>
    %143 = vector.broadcast %118 : vector<1x96xf32> to vector<10x96xf32>
    %144 = arith.addf %142, %143 : vector<10x96xf32>
    %145 = vector.extract_strided_slice %144 {offsets = [0, 0], sizes = [10, 16], strides = [1, 1]} : vector<10x96xf32> to vector<10x16xf32>
    %146 = vector.extract_strided_slice %144 {offsets = [0, 32], sizes = [10, 16], strides = [1, 1]} : vector<10x96xf32> to vector<10x16xf32>
    %147 = vector.extract_strided_slice %144 {offsets = [0, 64], sizes = [10, 16], strides = [1, 1]} : vector<10x96xf32> to vector<10x16xf32>
    %cst_59 = arith.constant dense<0.000000e+00> : vector<10x10xf32>
    %148 = tpu.matmul %145, %146, %cst_59 {dimension_numbers = #tpu.dot_dimension_numbers<[1], [1], [0], [0], [0, 0, 1, 0], [], []>} : vector<10x16xf32>, vector<10x16xf32>, vector<10x10xf32> -> vector<10x10xf32>
    %149 = arith.addf %148, %5 : vector<10x10xf32>
    %cst_60 = arith.constant dense<0xFF800000> : vector<10xf32>
    %150 = vector.multi_reduction <maximumf>, %149, %cst_60 [1] : vector<10x10xf32> to vector<10xf32>
    %151 = vector.shape_cast %150 : vector<10xf32> to vector<10x1xf32>
    %152 = vector.broadcast %151 : vector<10x1xf32> to vector<10x10xf32>
    %153 = arith.subf %149, %152 : vector<10x10xf32>
    %154 = math.exp %153 : vector<10x10xf32>
    %cst_61 = arith.constant dense<0.000000e+00> : vector<10xf32>
    %155 = vector.multi_reduction <add>, %154, %cst_61 [1] : vector<10x10xf32> to vector<10xf32>
    %156 = vector.shape_cast %155 : vector<10xf32> to vector<10x1xf32>
    %157 = tpu.reciprocal %156 {approx = true} : vector<10x1xf32> -> vector<10x1xf32>
    %158 = vector.broadcast %157 : vector<10x1xf32> to vector<10x10xf32>
    %159 = arith.mulf %154, %158 : vector<10x10xf32>
    %cst_62 = arith.constant dense<0.000000e+00> : vector<10x16xf32>
    %160 = tpu.matmul %159, %147, %cst_62 {dimension_numbers = #tpu.dot_dimension_numbers<[1], [0], [0], [1], [0, 0, 1, 1], [], []>} : vector<10x10xf32>, vector<10x16xf32>, vector<10x16xf32> -> vector<10x16xf32>
    %161 = vector.extract_strided_slice %144 {offsets = [0, 16], sizes = [10, 16], strides = [1, 1]} : vector<10x96xf32> to vector<10x16xf32>
    %162 = vector.extract_strided_slice %144 {offsets = [0, 48], sizes = [10, 16], strides = [1, 1]} : vector<10x96xf32> to vector<10x16xf32>
    %163 = vector.extract_strided_slice %144 {offsets = [0, 80], sizes = [10, 16], strides = [1, 1]} : vector<10x96xf32> to vector<10x16xf32>
    %cst_63 = arith.constant dense<0.000000e+00> : vector<10x10xf32>
    %164 = tpu.matmul %161, %162, %cst_63 {dimension_numbers = #tpu.dot_dimension_numbers<[1], [1], [0], [0], [0, 0, 1, 0], [], []>} : vector<10x16xf32>, vector<10x16xf32>, vector<10x10xf32> -> vector<10x10xf32>
    %165 = arith.addf %164, %5 : vector<10x10xf32>
    %cst_64 = arith.constant dense<0xFF800000> : vector<10xf32>
    %166 = vector.multi_reduction <maximumf>, %165, %cst_64 [1] : vector<10x10xf32> to vector<10xf32>
    %167 = vector.shape_cast %166 : vector<10xf32> to vector<10x1xf32>
    %168 = vector.broadcast %167 : vector<10x1xf32> to vector<10x10xf32>
    %169 = arith.subf %165, %168 : vector<10x10xf32>
    %170 = math.exp %169 : vector<10x10xf32>
    %cst_65 = arith.constant dense<0.000000e+00> : vector<10xf32>
    %171 = vector.multi_reduction <add>, %170, %cst_65 [1] : vector<10x10xf32> to vector<10xf32>
    %172 = vector.shape_cast %171 : vector<10xf32> to vector<10x1xf32>
    %173 = tpu.reciprocal %172 {approx = true} : vector<10x1xf32> -> vector<10x1xf32>
    %174 = vector.broadcast %173 : vector<10x1xf32> to vector<10x10xf32>
    %175 = arith.mulf %170, %174 : vector<10x10xf32>
    %cst_66 = arith.constant dense<0.000000e+00> : vector<10x16xf32>
    %176 = tpu.matmul %175, %163, %cst_66 {dimension_numbers = #tpu.dot_dimension_numbers<[1], [0], [0], [1], [0, 0, 1, 1], [], []>} : vector<10x10xf32>, vector<10x16xf32>, vector<10x16xf32> -> vector<10x16xf32>
    %177 = tpu.concatenate %160, %176 in 1 : vector<10x16xf32>, vector<10x16xf32> -> vector<10x32xf32>
    %c1_67 = arith.constant 1 : index
    %c0_68 = arith.constant 0 : index
    %c0_69 = arith.constant 0 : index
    %178 = vector.load %arg6[%c1_67, %c0_68, %c0_69] : memref<2x32x32xf32, #tpu.memory_space<vmem>>, vector<1x32x32xf32>
    %179 = vector.shape_cast %178 : vector<1x32x32xf32> to vector<32x32xf32>
    %cst_70 = arith.constant dense<0.000000e+00> : vector<10x32xf32>
    %180 = tpu.matmul %177, %179, %cst_70 {dimension_numbers = #tpu.dot_dimension_numbers<[1], [0], [0], [1], [0, 0, 1, 1], [], []>} : vector<10x32xf32>, vector<32x32xf32>, vector<10x32xf32> -> vector<10x32xf32>
    %181 = arith.addf %115, %180 : vector<10x32xf32>
    %182 = vector.broadcast %119 : vector<1x32xf32> to vector<10x32xf32>
    %183 = arith.addf %181, %182 : vector<10x32xf32>
    %cst_71 = arith.constant dense<0.000000e+00> : vector<10xf32>
    %184 = vector.multi_reduction <add>, %183, %cst_71 [1] : vector<10x32xf32> to vector<10xf32>
    %185 = vector.shape_cast %184 : vector<10xf32> to vector<10x1xf32>
    %cst_72 = arith.constant 3.200000e+01 : f32
    %186 = vector.broadcast %cst_72 : f32 to vector<10x1xf32>
    %187 = arith.divf %185, %186 : vector<10x1xf32>
    %188 = vector.broadcast %187 : vector<10x1xf32> to vector<10x32xf32>
    %189 = arith.subf %183, %188 : vector<10x32xf32>
    %190 = arith.mulf %189, %189 : vector<10x32xf32>
    %cst_73 = arith.constant dense<0.000000e+00> : vector<10xf32>
    %191 = vector.multi_reduction <add>, %190, %cst_73 [1] : vector<10x32xf32> to vector<10xf32>
    %192 = vector.shape_cast %191 : vector<10xf32> to vector<10x1xf32>
    %cst_74 = arith.constant 3.200000e+01 : f32
    %193 = vector.broadcast %cst_74 : f32 to vector<10x1xf32>
    %194 = arith.divf %192, %193 : vector<10x1xf32>
    %195 = vector.broadcast %187 : vector<10x1xf32> to vector<10x32xf32>
    %196 = arith.subf %183, %195 : vector<10x32xf32>
    %cst_75 = arith.constant 9.99999996E-13 : f32
    %197 = vector.broadcast %cst_75 : f32 to vector<10x1xf32>
    %198 = arith.addf %194, %197 : vector<10x1xf32>
    %199 = math.rsqrt %198 : vector<10x1xf32>
    %200 = vector.broadcast %199 : vector<10x1xf32> to vector<10x32xf32>
    %201 = arith.mulf %196, %200 : vector<10x32xf32>
    %c1_76 = arith.constant 1 : index
    %c0_77 = arith.constant 0 : index
    %c0_78 = arith.constant 0 : index
    %202 = vector.load %arg7[%c1_76, %c0_77, %c0_78] : memref<2x32x64xf32, #tpu.memory_space<vmem>>, vector<1x32x64xf32>
    %203 = vector.shape_cast %202 : vector<1x32x64xf32> to vector<32x64xf32>
    %cst_79 = arith.constant dense<0.000000e+00> : vector<10x64xf32>
    %204 = tpu.matmul %201, %203, %cst_79 {dimension_numbers = #tpu.dot_dimension_numbers<[1], [0], [0], [1], [0, 0, 1, 1], [], []>} : vector<10x32xf32>, vector<32x64xf32>, vector<10x64xf32> -> vector<10x64xf32>
    %205 = vector.broadcast %120 : vector<1x64xf32> to vector<10x64xf32>
    %206 = arith.addf %204, %205 : vector<10x64xf32>
    %207 = arith.mulf %206, %206 : vector<10x64xf32>
    %208 = arith.mulf %206, %207 : vector<10x64xf32>
    %cst_80 = arith.constant 4.471500e-02 : f32
    %209 = vector.broadcast %cst_80 : f32 to vector<10x64xf32>
    %210 = arith.mulf %209, %208 : vector<10x64xf32>
    %211 = arith.addf %206, %210 : vector<10x64xf32>
    %cst_81 = arith.constant 0.797884583 : f32
    %212 = vector.broadcast %cst_81 : f32 to vector<10x64xf32>
    %213 = arith.mulf %212, %211 : vector<10x64xf32>
    %214 = math.tanh %213 : vector<10x64xf32>
    %cst_82 = arith.constant 1.000000e+00 : f32
    %215 = vector.broadcast %cst_82 : f32 to vector<10x64xf32>
    %216 = arith.addf %215, %214 : vector<10x64xf32>
    %cst_83 = arith.constant 5.000000e-01 : f32
    %217 = vector.broadcast %cst_83 : f32 to vector<10x64xf32>
    %218 = arith.mulf %217, %216 : vector<10x64xf32>
    %219 = arith.mulf %206, %218 : vector<10x64xf32>
    %c1_84 = arith.constant 1 : index
    %c0_85 = arith.constant 0 : index
    %c0_86 = arith.constant 0 : index
    %220 = vector.load %arg8[%c1_84, %c0_85, %c0_86] : memref<2x64x32xf32, #tpu.memory_space<vmem>>, vector<1x64x32xf32>
    %221 = vector.shape_cast %220 : vector<1x64x32xf32> to vector<64x32xf32>
    %cst_87 = arith.constant dense<0.000000e+00> : vector<10x32xf32>
    %222 = tpu.matmul %219, %221, %cst_87 {dimension_numbers = #tpu.dot_dimension_numbers<[1], [0], [0], [1], [0, 0, 1, 1], [], []>} : vector<10x64xf32>, vector<64x32xf32>, vector<10x32xf32> -> vector<10x32xf32>
    %223 = arith.addf %183, %222 : vector<10x32xf32>
    %224 = vector.broadcast %121 : vector<1x32xf32> to vector<10x32xf32>
    %225 = arith.addf %223, %224 : vector<10x32xf32>
    %c0_88 = arith.constant 0 : index
    %c0_89 = arith.constant 0 : index
    %226 = vector.load %arg4[%c0_88, %c0_89] : memref<8x10xf32, #tpu.memory_space<vmem>>, vector<8x10xf32>
    %cst_90 = arith.constant dense<0.000000e+00> : vector<8x32xf32>
    %227 = tpu.matmul %226, %225, %cst_90 {dimension_numbers = #tpu.dot_dimension_numbers<[1], [0], [0], [1], [0, 0, 1, 1], [], []>} : vector<8x10xf32>, vector<10x32xf32>, vector<8x32xf32> -> vector<8x32xf32>
    %cst_91 = arith.constant dense<0.000000e+00> : vector<8xf32>
    %228 = vector.multi_reduction <add>, %227, %cst_91 [1] : vector<8x32xf32> to vector<8xf32>
    %229 = vector.shape_cast %228 : vector<8xf32> to vector<8x1xf32>
    %cst_92 = arith.constant 3.200000e+01 : f32
    %230 = vector.broadcast %cst_92 : f32 to vector<8x1xf32>
    %231 = arith.divf %229, %230 : vector<8x1xf32>
    %232 = vector.broadcast %231 : vector<8x1xf32> to vector<8x32xf32>
    %233 = arith.subf %227, %232 : vector<8x32xf32>
    %234 = arith.mulf %233, %233 : vector<8x32xf32>
    %cst_93 = arith.constant dense<0.000000e+00> : vector<8xf32>
    %235 = vector.multi_reduction <add>, %234, %cst_93 [1] : vector<8x32xf32> to vector<8xf32>
    %236 = vector.shape_cast %235 : vector<8xf32> to vector<8x1xf32>
    %cst_94 = arith.constant 3.200000e+01 : f32
    %237 = vector.broadcast %cst_94 : f32 to vector<8x1xf32>
    %238 = arith.divf %236, %237 : vector<8x1xf32>
    %239 = vector.broadcast %231 : vector<8x1xf32> to vector<8x32xf32>
    %240 = arith.subf %227, %239 : vector<8x32xf32>
    %cst_95 = arith.constant 9.99999996E-13 : f32
    %241 = vector.broadcast %cst_95 : f32 to vector<8x1xf32>
    %242 = arith.addf %238, %241 : vector<8x1xf32>
    %243 = math.rsqrt %242 : vector<8x1xf32>
    %244 = vector.broadcast %243 : vector<8x1xf32> to vector<8x32xf32>
    %245 = arith.mulf %240, %244 : vector<8x32xf32>
    %c0_96 = arith.constant 0 : index
    %c0_97 = arith.constant 0 : index
    %246 = vector.load %arg10[%c0_96, %c0_97] : memref<32x128xf32, #tpu.memory_space<vmem>>, vector<32x128xf32>
    %cst_98 = arith.constant dense<0.000000e+00> : vector<8x128xf32>
    %247 = tpu.matmul %245, %246, %cst_98 {dimension_numbers = #tpu.dot_dimension_numbers<[1], [0], [0], [1], [0, 0, 1, 1], [], []>} : vector<8x32xf32>, vector<32x128xf32>, vector<8x128xf32> -> vector<8x128xf32>
    %c0_99 = arith.constant 0 : index
    %c0_100 = arith.constant 0 : index
    %248 = vector.load %arg11[%c0_99, %c0_100] : memref<1x128xf32, #tpu.memory_space<vmem>>, vector<1x128xf32>
    %249 = vector.broadcast %248 : vector<1x128xf32> to vector<8x128xf32>
    %250 = arith.addf %247, %249 : vector<8x128xf32>
    %c0_101 = arith.constant 0 : index
    %c0_102 = arith.constant 0 : index
    %251 = vector.load %arg12[%c0_101, %c0_102] : memref<8x128xf32, #tpu.memory_space<vmem>>, vector<8x128xf32>
    tpu.vector_store %arg12[%c0_101, %c0_102], %250 {strides = array<i32>} : memref<8x128xf32, #tpu.memory_space<vmem>>, vector<8x128xf32>,
    return
  }
}

</mosaic_0001>

<bundles_post_ra>
// kernel: _forward_jit.1
= control target key start
LH: loop header
LB: loop body
LE: loop exit
PB: predicated region body
PF: predicated region fallthrough
CT: control target
= control target key end

     0   :  { %vm590_vm0 = vcmask 261120   ;;  %vm594_vm1 = vcmask 254976   ;;  %vm714_vm2 = vcmask 130048   ;;  %s3245_s14 = smov 96   ;;  %s3246_s15 = smov 80   ;;  %vm798_vm4 = vcmask 80896   ;;  %s3873_s1 = inlined_call_operand.vmem [shape: bf16[768,32], index: 1, kind: input, shape index: {}]   ;;  %s3874_s0 = inlined_call_operand.vmem [shape: bf16[10,768], index: 0, kind: input, shape index: {}]   ;;  %s3875_s2 = inlined_call_operand.vmem [shape: f32[10,32], index: 2, kind: input, shape index: {}]   ;;  %s3876_s5 = inlined_call_operand.vmem [shape: f32[2,32,96], index: 5, kind: input, shape index: {}]   ;;  %s3877_s9 = inlined_call_operand.vmem [shape: f32[2,4,128], index: 9, kind: input, shape index: {}]   ;;  %s3878_s3 = inlined_call_operand.vmem [shape: f32[10,10], index: 3, kind: input, shape index: {}]   ;;  %s3879_s6 = inlined_call_operand.vmem [shape: f32[2,32,32], index: 6, kind: input, shape index: {}]   ;;  %s3880_s7 = inlined_call_operand.vmem [shape: f32[2,32,64], index: 7, kind: input, shape index: {}]   ;;  %s3881_s8 = inlined_call_operand.vmem [shape: f32[2,64,32], index: 8, kind: input, shape index: {}]   ;;  %s3882_s4 = inlined_call_operand.vmem [shape: f32[8,10], index: 4, kind: input, shape index: {}]   ;;  %s3883_s10 = inlined_call_operand.vmem [shape: f32[32,128], index: 10, kind: input, shape index: {}]   ;;  %s3884_s11 = inlined_call_operand.vmem [shape: f32[1,128], index: 11, kind: input, shape index: {}]   ;;  %s3885_s12 = inlined_call_operand.vmem [shape: f32[8,128], index: 12, kind: output, shape index: {}]  }
   0x1   :  { %v3130_v0 = vld [vmem:[%s3873_s1 + $0x40] sm:$0xff]   ;;  %v3134_v4 = vld [vmem:[%s3873_s1 + $0x48] sm:$0xff]   ;;  %v3138_v8 = vld [vmem:[%s3873_s1 + $0x50] sm:$0xff]   ;;  %s3247_s16 = smov 112   ;;  %vm802_vm5 = vcmask 74752   ;;  %vm833_vm6 = vcmask 1041408  }
   0x2   :  { %v3131_v1 = vld [vmem:[%s3873_s1] sm:$0xff]   ;;  %2602 = vmatprep.subr.bf16.mxu0 %v3130_v0  ;;  %v3135_v5 = vld [vmem:[%s3873_s1 + $0x8] sm:$0xff]   ;;  %v3139_v9 = vld [vmem:[%s3873_s1 + $0x10] sm:$0xff]   ;;  %vm3249_vm7 = vmmov 1   ;;  %s3250_s21 = smov 48   ;;  %s3251_s27 = smov 16  }
   0x3   :  { %v3132_v2 = vld [vmem:[%s3873_s1 + $0xc0] sm:$0xff]   ;;  %2603 = vmatpush3.bf16.msra.mxu0 %v3131_v1  ;;  %v3136_v6 = vld [vmem:[%s3873_s1 + $0xc8] sm:$0xff]   ;;  %v3140_v10 = vld [vmem:[%s3873_s1 + $0xd0] sm:$0xff]   ;;  %vm1356_vm9 = vcmask 523264   ;;  %vm3253_vm10 = vmmov 0  }
   0x4   :  { %v3133_v3 = vld [vmem:[%s3873_s1 + $0x80] sm:$0xff]   ;;  %2624 = vmatprep.subr.bf16.mxu1 %v3132_v2  ;;  %2604 = vmatprep.subr.bf16.mxu0 %v3134_v4  ;;  %v3137_v7 = vld [vmem:[%s3873_s1 + $0x88] sm:$0xff]   ;;  %v3141_v11 = vld [vmem:[%s3873_s1 + $0x90] sm:$0xff]  }
   0x5   :  { %2625 = vmatpush3.bf16.msra.mxu1 %v3133_v3  ;;  %v3142_v12 = vld [vmem:[%s3873_s1 + $0x58] sm:$0xff]   ;;  %v3146_v16 = vld [vmem:[%s3873_s1 + $0x60] sm:$0xff]   ;;  %v3150_v20 = vld [vmem:[%s3873_s1 + $0x68] sm:$0xff]  }
   0x6   :  { %2626 = vmatprep.subr.bf16.mxu1 %v3136_v6  ;;  %v3143_v13 = vld [vmem:[%s3873_s1 + $0x18] sm:$0xff]   ;;  %v3147_v17 = vld [vmem:[%s3873_s1 + $0x20] sm:$0xff]   ;;  %v3151_v21 = vld [vmem:[%s3873_s1 + $0x28] sm:$0xff]  }
   0x7   :  { %2605 = vmatpush3.bf16.msra.mxu0 %v3135_v5  ;;  %v3144_v14 = vld [vmem:[%s3873_s1 + $0xd8] sm:$0xff]   ;;  %v3148_v18 = vld [vmem:[%s3873_s1 + $0xe0] sm:$0xff]   ;;  %v3152_v22 = vld [vmem:[%s3873_s1 + $0xe8] sm:$0xff]  }
   0x8   :  { %2606 = vmatprep.subr.bf16.mxu0 %v3138_v8  ;;  %v3145_v15 = vld [vmem:[%s3873_s1 + $0x98] sm:$0xff]   ;;  %v3149_v19 = vld [vmem:[%s3873_s1 + $0xa0] sm:$0xff]   ;;  %v3153_v23 = vld [vmem:[%s3873_s1 + $0xa8] sm:$0xff]  }
   0x9   :  { %2627 = vmatpush3.bf16.msra.mxu1 %v3137_v7  ;;  %v3154_v24 = vld [vmem:[%s3873_s1 + $0x70] sm:$0xff]   ;;  %v3158_v28 = vld [vmem:[%s3873_s1 + $0x78] sm:$0xff]   ;;  %v3165_v34 = vld [vmem:[%s3873_s1 + $0x140] sm:$0xff]  }
   0xa   :  { %2628 = vmatprep.subr.bf16.mxu1 %v3140_v10  ;;  %v3155_v25 = vld [vmem:[%s3873_s1 + $0x30] sm:$0xff]   ;;  %v3159_v29 = vld [vmem:[%s3873_s1 + $0x38] sm:$0xff]   ;;  %v3166_v35 = vld [vmem:[%s3874_s0 + $0x8] ss:$24 sps:$4 sm:$0x1f]  }
   0xb   :  { %2607 = vmatpush3.bf16.msra.mxu0 %v3139_v9  ;;  %v3156_v26 = vld [vmem:[%s3873_s1 + $0xf0] sm:$0xff]   ;;  %v3160_v30 = vld [vmem:[%s3873_s1 + $0xf8] sm:$0xff]   ;;  %v3168_v36 = vld [vmem:[%s3874_s0 + $0xc] ss:$24 sps:$4 sm:$0x1f]  }
   0xc   :  { %2608 = vmatprep.subr.bf16.mxu0 %v3142_v12  ;;  %v3157_v27 = vld [vmem:[%s3873_s1 + $0xb0] sm:$0xff]   ;;  %v3161_v31 = vld [vmem:[%s3874_s0] ss:$24 sps:$4 sm:$0x1f]   ;;  %537 = vmatprep.mubr.bf16.mxu1 %v3168_v36  ;;  %v3170_v38 = vld [vmem:[%s3873_s1 + $0x148] sm:$0xff]  }
   0xd   :  { %2629 = vmatpush3.bf16.msra.mxu1 %v3141_v11  ;;  %v3163_v32 = vld [vmem:[%s3874_s0 + $0x4] ss:$24 sps:$4 sm:$0x1f]   ;;  %v3171_v39 = vld [vmem:[%s3873_s1 + $0x108] sm:$0xff]   ;;  %v3172_v40 = vld [vmem:[%s3873_s1 + $0x150] sm:$0xff]  }
   0xe   :  { %2630 = vmatprep.subr.bf16.mxu1 %v3144_v14  ;;  %v3164_v33 = vld [vmem:[%s3873_s1 + $0xb8] sm:$0xff]   ;;  %496 = vmatprep.mubr.bf16.mxu0 %v3163_v32  ;;  %v3169_v37 = vld [vmem:[%s3873_s1 + $0x100] sm:$0xff]   ;;  %v3173_v41 = vld [vmem:[%s3873_s1 + $0x110] sm:$0xff]  }
   0xf   :  { %2609 = vmatpush3.bf16.msra.mxu0 %v3143_v13  ;;  %v3174_v42 = vld [vmem:[%s3873_s1 + $0x158] sm:$0xff]   ;;  %v3176_v44 = vld [vmem:[%s3873_s1 + $0x160] sm:$0xff]   ;;  %v3178_v46 = vld [vmem:[%s3873_s1 + $0x168] sm:$0xff]  }
  0x10   :  { %2610 = vmatprep.subr.bf16.mxu0 %v3146_v16  ;;  %v3175_v43 = vld [vmem:[%s3873_s1 + $0x118] sm:$0xff]   ;;  %v3177_v45 = vld [vmem:[%s3873_s1 + $0x120] sm:$0xff]   ;;  %v3186_v47 = vld [vmem:[%s3874_s0 + $0x14] ss:$24 sps:$4 sm:$0x1f]  }
  0x11   :  { %2631 = vmatpush3.bf16.msra.mxu1 %v3145_v15  ;;  %v3179_v48 = vld [vmem:[%s3873_s1 + $0x128] sm:$0xff]   ;;  %v3180_v49 = vld [vmem:[%s3873_s1 + $0x170] sm:$0xff]   ;;  %v3182_v51 = vld [vmem:[%s3873_s1 + $0x178] sm:$0xff]  }
  0x12   :  { %2632 = vmatprep.subr.bf16.mxu1 %v3148_v18  ;;  %v3181_v50 = vld [vmem:[%s3873_s1 + $0x130] sm:$0xff]   ;;  %v3183_v52 = vld [vmem:[%s3873_s1 + $0x138] sm:$0xff]   ;;  %v144_v55 = vld [vmem:[%s3875_s2] sm:$0xff] }
  0x13   :  { %2611 = vmatpush3.bf16.msra.mxu0 %v3147_v17  ;;  %v3184_v53 = vld [vmem:[%s3874_s0 + $0x10] ss:$24 sps:$4 sm:$0x1f]   ;;  %v622_v32 = vld [vmem:[%s3876_s5 + $0x18] sm:$0xff]  ;;  %vm3536_vm3 = vmpackc.low %vm714_vm2, %vm714_vm2 }
  0x14   :  { %2612 = vmatprep.subr.bf16.mxu0 %v3150_v20  ;;  %v145_v60 = vld [vmem:[%s3875_s2 + $0x8] sm:$0x3]  ;;  %vm3563_vm8 = vmpackc.low %vm833_vm6, %vm3249_vm7 }
  0x15   :  { %2633 = vmatpush3.bf16.msra.mxu1 %v3149_v19 }
  0x16   :  { %2634 = vmatprep.subr.bf16.mxu1 %v3152_v22 }
  0x17   :  { %2613 = vmatpush3.bf16.msra.mxu0 %v3151_v21 }
  0x18   :  { %2614 = vmatprep.subr.bf16.mxu0 %v3154_v24 }
  0x19   :  { %2635 = vmatpush3.bf16.msra.mxu1 %v3153_v23 }
  0x1a   :  { %2636 = vmatprep.subr.bf16.mxu1 %v3156_v26 }
  0x1b   :  { %2615 = vmatpush3.bf16.msra.mxu0 %v3155_v25 }
  0x1c   :  { %2616 = vmatprep.subr.bf16.mxu0 %v3158_v28  ;;  %v619_v28 = vld [vmem:[%s3876_s5] sm:$0xff] }
  0x1d   :  { %2637 = vmatpush3.bf16.msra.mxu1 %v3157_v27 }
  0x1e   :  { %2638 = vmatprep.subr.bf16.mxu1 %v3160_v30  ;;  %v621_v30 = vld [vmem:[%s3876_s5 + $0x10] sm:$0xff] }
  0x1f   :  { %2617 = vmatpush3.bf16.msra.mxu0 %v3159_v29  ;;  %v620_v29 = vld [vmem:[%s3876_s5 + $0x8] sm:$0xff] }
  0x20   :  { %2646 = vmatprep.subr.bf16.mxu0 %v3165_v34 }
  0x21   :  { %2639 = vmatpush3.bf16.msra.mxu1 %v3164_v33  ;;  %v2946_v33 = vpack.c.bf16 %v622_v32, %v621_v30 }
  0x22   :  { %497 = vmatmul.mubr.bf16.vlgmr.msra.gmra.mrb[0].mxu0 %v3161_v31  ;;  %v2942_v31 = vpack.c.bf16 %v620_v29, %v619_v28 }
  0x23   :  { %2647 = vmatpush3.bf16.msra.mxu0 %v3169_v37  ;;  %578 = vmatprep.mubr.bf16.mxu0 %v3186_v47  ;;  %v3520_v47 = vld [vmem:[%s3877_s9] sm:$0xf] }
  0x24   :  { %538 = vmatmul.mubr.bf16.vlgmr.msra.gmra.mrb[0].mxu1 %v3166_v35  ;;  %2648 = vmatprep.subr.bf16.mxu0 %v3170_v38 }
  0x25   :  { %2943 = vmatprep.subr.bf16.mxu1 %v2942_v31 }
  0x26   :  { %2945 = vmatpush3.bf16.msra.mxu1 %v2942_v31 }
  0x27   :  { %2649 = vmatpush3.bf16.msra.mxu0 %v3171_v39  ;;  %2947 = vmatprep.subr.bf16.mxu1 %v2946_v33 }
  0x28   :  { %2650 = vmatprep.subr.bf16.mxu0 %v3172_v40 }
  0x2a   :  { %2949 = vmatpush3.bf16.msra.mxu1 %v2946_v33 }
  0x2b   :  { %2651 = vmatpush3.bf16.msra.mxu0 %v3173_v41 }
  0x2c   :  { %2652 = vmatprep.subr.bf16.mxu0 %v3174_v42 }
  0x2f   :  { %2653 = vmatpush3.bf16.msra.mxu0 %v3175_v43 }
  0x30   :  { %2654 = vmatprep.subr.bf16.mxu0 %v3176_v44  ;;  %v623_v44 = vlaneseq }
  0x33   :  { %2655 = vmatpush3.bf16.msra.mxu0 %v3177_v45  ;;  %v3514_v45 = vshrl.u32 %v623_v44, 7 }
  0x34   :  { %2656 = vmatprep.subr.bf16.mxu0 %v3178_v46 }
  0x35   :  { %v625_v46 = vsub.s32 0, %v3514_v45 }
  0x37   :  { %2657 = vmatpush3.bf16.msra.mxu0 %v3179_v48  ;;  %v626_v48 = vrot.slane %v3520_v47, %v625_v46 }
  0x38   :  { %2658 = vmatprep.subr.bf16.mxu0 %v3180_v49 }
  0x3b   :  { %2659 = vmatpush3.bf16.msra.mxu0 %v3181_v50 }
  0x3c   :  { %2660 = vmatprep.subr.bf16.mxu0 %v3182_v51 }
  0x3f   :  { %2661 = vmatpush3.bf16.msra.mxu0 %v3183_v52 }
  0x42   :  { %579 = vmatmul.mubr.bf16.vlgmr.msra.gmra.mrb[4].mxu0 %v3184_v53 }
  0xf5   :  { %v2618_v54 = vpop.f32.mrb[0].mxu0 }
  0xf6   :  { %v2619_v56 = vpop.f32.mrb[1].mxu0 }
  0xf7   :  { %v2620_v57 = vadd.f32 %v2619_v56, %v2618_v54  ;;  %v2621_v58 = vpop.f32.mrb[2].mxu0  ;;  %v2640_v59 = vpop.f32.mrb[0].mxu1 }
  0xf8   :  { %v2622_v61 = vpop.f32.mrb[3].mxu0  ;;  %v2641_v0 = vpop.f32.mrb[1].mxu1 }
  0xf9   :  { %v499_v62 = vadd.f32 %v2620_v57, %v144_v55  ;;  %v2623_v63 = vadd.f32 %v2622_v61, %v2621_v58  ;;  %v2642_v1 = vadd.f32 %v2641_v0, %v2640_v59  ;;  %v2643_v2 = vpop.f32.mrb[2].mxu1  ;;  %v3548_v59 = vld [vmem:[%s3878_s3] sm:$0xff]  ;;  %v3553_v61 = vld [vmem:[%s3878_s3 + $0x8] sm:$0x3]  ;;  %s3248_s3 = smov 64  }
  0xfa   :  { %v2644_v4 = vpop.f32.mrb[3].mxu1 }
  0xfb   :  { %v502_v3 = vadd.f32 %v2623_v63, %v145_v60  ;;  %v540_v5 = vadd.f32 %v2642_v1, %v499_v62  ;;  %v2645_v6 = vadd.f32 %v2644_v4, %v2643_v2 }
  0xfd   :  { %v543_v7 = vadd.f32 %v2645_v6, %v502_v3 }
 0x115   :  { %v2662_v8 = vpop.f32.mrb[4].mxu0 }
 0x116   :  { %v2663_v9 = vpop.f32.mrb[5].mxu0 }
 0x117   :  { %v2664_v10 = vadd.f32 %v2663_v9, %v2662_v8  ;;  %v2665_v11 = vpop.f32.mrb[6].mxu0 }
 0x118   :  { %v2666_v12 = vpop.f32.mrb[7].mxu0 }
 0x119   :  { %v3488_v13 = vadd.f32 %v2664_v10, %v540_v5  ;;  %v2667_v14 = vadd.f32 %v2666_v12, %v2665_v11 }
 0x11b   :  { %v3490_v15 = vadd.f32 %v2667_v14, %v543_v7  ;;  %v591_v16 = vsel %vm590_vm0, %v3488_v13, 0.0 }
 0x11c   :  { %592 = vadd.xlane.f32.xlu0 %v591_v16 }
 0x11d   :  { %v595_v17 = vsel %vm594_vm1, %v3490_v15, 0.0 }
 0x120   :  { %596 = vadd.xlane.f32.xlu0 %v595_v17 }
 0x1a9   :  { %v593_v18 = vpop.xlane.xlu0 %592 }
 0x1aa   :  { %v599_v19 = vmul.f32 0.03125, %v593_v18 }
 0x1ac   :  { %v601_v20 = vsub.f32 %v3488_v13, %v599_v19 }
 0x1ad   :  { %v597_v21 = vpop.xlane.xlu0 %596 }
 0x1ae   :  { %v600_v22 = vmul.f32 0.03125, %v597_v21  ;;  %v603_v23 = vmul.f32 %v601_v20, %v601_v20 }
 0x1b0   :  { %v602_v24 = vsub.f32 %v3490_v15, %v600_v22  ;;  %v605_v25 = vsel %vm590_vm0, %v603_v23, 0.0 }
 0x1b1   :  { %606 = vadd.xlane.f32.xlu1 %v605_v25 }
 0x1b2   :  { %v604_v26 = vmul.f32 %v602_v24, %v602_v24 }
 0x1b4   :  { %v608_v27 = vsel %vm594_vm1, %v604_v26, 0.0 }
 0x1b5   :  { %609 = vadd.xlane.f32.xlu1 %v608_v27 }
 0x23e   :  { %v607_v34 = vpop.xlane.xlu1 %606 }
 0x23f   :  { %v611_v35 = vmul.f32 0.03125, %v607_v34 }
 0x241   :  { %v613_v36 = vadd.f32 1e-12, %v611_v35 }
 0x242   :  { %v610_v37 = vpop.xlane.xlu1 %609 }
 0x243   :  { %3187 = vrsqrt.f32 %v613_v36  ;;  %v612_v38 = vmul.f32 0.03125, %v610_v37 }
 0x245   :  { %v614_v39 = vadd.f32 1e-12, %v612_v38 }
 0x247   :  { %3189 = vrsqrt.f32 %v614_v39 }
 0x24d   :  { %v3188_v40 = vpop.eup %3187 }
 0x24e   :  { %v617_v41 = vmul.f32 %v3188_v40, %v601_v20 }
 0x250   :  { %2772 = vmatprep.mubr.msk.f32.mxu1 %vm590_vm0, %v617_v41 }
 0x251   :  { %v3190_v42 = vpop.eup %3189 }
 0x252   :  { %v618_v43 = vmul.f32 %v3190_v42, %v602_v24 }
 0x254   :  { %2773 = vmatmul.mubr.msk.f32.vlgmr.msra.gmra.mrb[4].mxu1 %vm590_vm0, %v618_v43 }
 0x327   :  { %v2774_v49 = vpop.f32.mrb[4].mxu1 }
 0x328   :  { %v705_v50 = vadd.f32 %v2774_v49, %v626_v48  ;;  %v699_v51 = vpop.f32.mrb[5].mxu1 }
 0x329   :  { %v700_v52 = vadd.f32 %v699_v51, %v626_v48 }
 0x32b   :  { %2779 = vmatprep.mubr.msk.f32.mxu1 %vm714_vm2, %v700_v52  ;;  %v3526_v53 = vpack.i.bf16 %v705_v50, %v700_v52 }
 0x32d   :  { %3091 = vrot.lane.b32.xlu0 %v3526_v53, %s3245_s14 }
 0x331   :  { %3101 = vrot.lane.b32.xlu0 %v3526_v53, %s3246_s15 }
 0x335   :  { %911 = vrot.lane.b32.xlu0 %v700_v52, %s3247_s16 }
 0x339   :  { %913 = vrot.lane.b32.xlu0 %v705_v50, %s3247_s16 }
 0x39f   :  { %v3092_v54 = vpop.permute.xlu0 %3091 }
 0x3a0   :  { %v3094_v55 = vunpack.i.h.bf16 %v3092_v54  ;;  %v3093_v56 = vunpack.i.l.bf16 %v3092_v54 }
 0x3a2   :  { %v2950_v58 = vpack.c.bf16 %v3094_v55, %v3093_v56 }
 0x3a3   :  { %v3102_v17 = vpop.permute.xlu0 %3101 }
 0x3a4   :  { %2952 = vmatprep.subr.msk.bf16.mxu1 %vm3536_vm3, %v2950_v58  ;;  %v3104_v19 = vunpack.i.h.bf16 %v3102_v17  ;;  %v3103_v20 = vunpack.i.l.bf16 %v3102_v17 }
 0x3a5   :  { %2955 = vmatpush3.bf16.xpose.msk.msra.mxu1 %vm3536_vm3, %v2950_v58 }
 0x3a6   :  { %v2962_v25 = vpack.c.bf16 %v3104_v19, %v3103_v20 }
 0x3a7   :  { %v912_v30 = vpop.permute.xlu0 %911 }
 0x3ab   :  { %v914_v31 = vpop.permute.xlu0 %913 }
 0x3ac   :  { %2780 = vmatmul.mubr.msk.f32.vlgmr.msra.gmra.mrb[6].mxu1 %vm714_vm2, %v705_v50 }
 0x47f   :  { %v2781_v60 = vpop.f32.mrb[6].mxu1 }
 0x480   :  { %v789_v62 = vpop.f32.mrb[7].mxu1  ;;  %v795_v0 = vadd.f32 %v2781_v60, %v3553_v61 }
 0x481   :  { %v790_v63 = vadd.f32 %v789_v62, %v3548_v59 }
 0x482   :  { %v803_v2 = vsel %vm802_vm5, %v795_v0, -inf }
 0x483   :  { %v799_v1 = vsel %vm798_vm4, %v790_v63, -inf }
 0x484   :  { %800 = vmax.xlane.f32.xlu1 %v799_v1 }
 0x488   :  { %804 = vmax.xlane.f32.xlu1 %v803_v2  ;;  %v1122_v2 = vld [vmem:[%s3879_s6] sm:$0xff] }
 0x511   :  { %v801_v3 = vpop.xlane.xlu1 %800 }
 0x512   :  { %v806_v4 = vsub.f32 %v790_v63, %v801_v3  ;;  %v1123_v3 = vld [vmem:[%s3879_s6 + $0x8] sm:$0xff] }
 0x514   :  { %v808_v7 = vmul.f32 1.442695, %v806_v4  ;;  %v1124_v4 = vld [vmem:[%s3879_s6 + $0x10] sm:$0xff] }
 0x515   :  { %v805_v5 = vpop.xlane.xlu1 %804 }
 0x516   :  { %v807_v6 = vsub.f32 %v795_v0, %v805_v5  ;;  %v2974_v5 = vpack.c.bf16 %v1123_v3, %v1122_v2  ;;  %v1354_v2 = vld [vmem:[%s3881_s8 + $0x30] sm:$0xff]  ;;  %v1355_v3 = vld [vmem:[%s3881_s8 + $0x38] sm:$0xff] }
 0x518   :  { %v810_v8 = vmul.f32 1.442695, %v807_v6  ;;  %v1125_v6 = vld [vmem:[%s3879_s6 + $0x18] sm:$0xff]  ;;  %2975 = vmatprep.subr.bf16.mxu0 %v2974_v5 }
 0x519   :  { %2977 = vmatpush3.bf16.msra.mxu0 %v2974_v5  ;;  %v1247_v5 = vsub.s32 2, %v3514_v45 }
 0x51a   :  { %3191 = vpow2.f32 %v810_v8 }
 0x51b   :  { %3193 = vpow2.f32 %v808_v7  ;;  %v2978_v7 = vpack.c.bf16 %v1125_v6, %v1124_v4  ;;  %v3002_v4 = vpack.c.bf16 %v1355_v3, %v1354_v2  ;;  %v1248_v6 = vrot.slane %v3520_v47, %v1247_v5 }
 0x51d   :  { %2979 = vmatprep.subr.bf16.mxu0 %v2978_v7 }
 0x51e   :  { %2981 = vmatpush3.bf16.msra.mxu0 %v2978_v7 }
 0x524   :  { %v3192_v9 = vpop.eup %3191 }
 0x525   :  { %v815_v10 = vsel %vm802_vm5, %v3192_v9, 0.0  ;;  %v3194_v11 = vpop.eup %3193 }
 0x526   :  { %816 = vadd.xlane.f32.xlu1 %v815_v10  ;;  %v812_v12 = vsel %vm798_vm4, %v3194_v11, 0.0 }
 0x52a   :  { %813 = vadd.xlane.f32.xlu1 %v812_v12 }
 0x53b   :  { %3096 = vrot.lane.b32.xlu1 %v3526_v53, %s3248_s3 }
 0x5b3   :  { %v817_v14 = vpop.xlane.xlu1 %816 }
 0x5b4   :  { %3195 = vrcp.f32 %v817_v14 }
 0x5b7   :  { %v814_v16 = vpop.xlane.xlu1 %813 }
 0x5b8   :  { %3197 = vrcp.f32 %v814_v16  ;;  %v1211_v16 = vsub.s32 1, %v3514_v45 }
 0x5ba   :  { %v1212_v17 = vrot.slane %v3520_v47, %v1211_v16 }
 0x5bb   :  { %v3097_v18 = vpop.permute.xlu1 %3096 }
 0x5bc   :  { %v3099_v21 = vunpack.i.h.bf16 %v3097_v18  ;;  %v3098_v22 = vunpack.i.l.bf16 %v3097_v18 }
 0x5be   :  { %v2956_v24 = vpack.c.bf16 %v3099_v21, %v3098_v22  ;;  %v3196_v26 = vpop.eup %3195 }
 0x5bf   :  { %v821_v29 = vmul.f32 %v3196_v26, %v3192_v9 }
 0x5c0   :  { %2958 = vmatprep.subr.msk.bf16.mxu1 %vm3563_vm8, %v2956_v24 }
 0x5c1   :  { %2961 = vmatpush3.bf16.msk.msra.mxu1 %vm3563_vm8, %v2956_v24 }
 0x5c2   :  { %v3198_v27 = vpop.eup %3197  ;;  %2964 = vmatprep.subr.msk.bf16.mxu1 %vm3536_vm3, %v2962_v25 }
 0x5c3   :  { %v820_v28 = vmul.f32 %v3198_v27, %v3194_v11 }
 0x5c5   :  { %2786 = vmatprep.mubr.msk.f32.mxu1 %vm798_vm4, %v820_v28 }
 0x5c6   :  { %2787 = vmatmul.mubr.msk.f32.vlgmr.msra.gmra.mrb[8].mxu1 %vm798_vm4, %v821_v29 }
 0x5c7   :  { %2793 = vmatprep.mubr.msk.f32.mxu1 %vm714_vm2, %v912_v30 }
 0x5ca   :  { %2967 = vmatpush3.bf16.xpose.msk.msra.mxu1 %vm3536_vm3, %v2962_v25 }
 0x5d1   :  { %2794 = vmatmul.mubr.msk.f32.vlgmr.msra.gmra.mrb[10].mxu1 %vm714_vm2, %v914_v31 }
 0x699   :  { %v2788_v32 = vpop.f32.mrb[8].mxu1 }
 0x69a   :  { %v902_v33 = vpop.f32.mrb[9].mxu1 }
 0x6a4   :  { %v2795_v34 = vpop.f32.mrb[10].mxu1 }
 0x6a5   :  { %v999_v35 = vadd.f32 %v2795_v34, %v3553_v61  ;;  %v993_v36 = vpop.f32.mrb[11].mxu1 }
 0x6a6   :  { %v994_v37 = vadd.f32 %v993_v36, %v3548_v59  ;;  %v1242_v36 = vld [vmem:[%s3880_s7 + $0x8] sm:$0xff] }
 0x6a7   :  { %v1005_v38 = vsel %vm802_vm5, %v999_v35, -inf }
 0x6a8   :  { %1006 = vmax.xlane.f32.xlu0 %v1005_v38  ;;  %v1002_v39 = vsel %vm798_vm4, %v994_v37, -inf }
 0x6a9   :  { %1003 = vmax.xlane.f32.xlu1 %v1002_v39  ;;  %v1244_v39 = vld [vmem:[%s3880_s7 + $0x18] sm:$0xff] }
 0x6ba   :  { %3106 = vrot.lane.b32.xlu1 %v3526_v53, %s3250_s21 }
 0x735   :  { %v1007_v40 = vpop.xlane.xlu0 %1006 }
 0x736   :  { %v1009_v41 = vsub.f32 %v999_v35, %v1007_v40  ;;  %v1004_v42 = vpop.xlane.xlu1 %1003  ;;  %v1241_v35 = vld [vmem:[%s3880_s7] sm:$0xff] }
 0x737   :  { %v1008_v43 = vsub.f32 %v994_v37, %v1004_v42  ;;  %v1243_v37 = vld [vmem:[%s3880_s7 + $0x10] sm:$0xff]  ;;  %v2982_v38 = vpack.c.bf16 %v1242_v36, %v1241_v35 }
 0x738   :  { %v1012_v44 = vmul.f32 1.442695, %v1009_v41  ;;  %v2986_v40 = vpack.c.bf16 %v1244_v39, %v1243_v37 }
 0x739   :  { %v1010_v48 = vmul.f32 1.442695, %v1008_v43 }
 0x73a   :  { %v3107_v49 = vpop.permute.xlu1 %3106 }
 0x73b   :  { %3199 = vpow2.f32 %v1010_v48  ;;  %v3109_v50 = vunpack.i.h.bf16 %v3107_v49  ;;  %v3108_v51 = vunpack.i.l.bf16 %v3107_v49 }
 0x73c   :  { %3201 = vpow2.f32 %v1012_v44 }
 0x73d   :  { %v2968_v52 = vpack.c.bf16 %v3109_v50, %v3108_v51 }
 0x73f   :  { %2970 = vmatprep.subr.msk.bf16.mxu1 %vm3563_vm8, %v2968_v52 }
 0x740   :  { %2973 = vmatpush3.bf16.msk.msra.mxu1 %vm3563_vm8, %v2968_v52 }
 0x741   :  { %2983 = vmatprep.subr.bf16.mxu1 %v2982_v38 }
 0x745   :  { %v3200_v54 = vpop.eup %3199 }
 0x746   :  { %v1014_v53 = vsel %vm798_vm4, %v3200_v54, 0.0  ;;  %v3202_v55 = vpop.eup %3201 }
 0x747   :  { %1015 = vadd.xlane.f32.xlu0 %v1014_v53  ;;  %v1017_v56 = vsel %vm802_vm5, %v3202_v55, 0.0  ;;  %v1348_v53 = vld [vmem:[%s3881_s8] sm:$0xff] }
 0x74b   :  { %1018 = vadd.xlane.f32.xlu0 %v1017_v56 }
 0x7d4   :  { %v1016_v58 = vpop.xlane.xlu0 %1015 }
 0x7d5   :  { %3203 = vrcp.f32 %v1016_v58  ;;  %v1350_v58 = vld [vmem:[%s3881_s8 + $0x10] sm:$0xff] }
 0x7d8   :  { %v1019_v60 = vpop.xlane.xlu0 %1018 }
 0x7d9   :  { %3205 = vrcp.f32 %v1019_v60  ;;  %v1351_v60 = vld [vmem:[%s3881_s8 + $0x18] sm:$0xff] }
 0x7df   :  { %v3204_v62 = vpop.eup %3203 }
 0x7e0   :  { %v1022_v63 = vmul.f32 %v3204_v62, %v3200_v54  ;;  %v2994_v62 = vpack.c.bf16 %v1351_v60, %v1350_v58  ;;  %v2559_v58 = vld [vmem:[%s3876_s5 + $0x38] sm:$0xff] }
 0x7e2   :  { %2800 = vmatprep.mubr.msk.f32.mxu1 %vm798_vm4, %v1022_v63  ;;  %v1352_v63 = vld [vmem:[%s3881_s8 + $0x20] sm:$0xff] }
 0x7e3   :  { %v3206_v0 = vpop.eup %3205 }
 0x7e4   :  { %v1023_v1 = vmul.f32 %v3206_v0, %v3202_v55  ;;  %v1349_v55 = vld [vmem:[%s3881_s8 + $0x8] sm:$0xff] }
 0x7e5   :  { %v2990_v56 = vpack.c.bf16 %v1349_v55, %v1348_v53  ;;  %v1353_v0 = vld [vmem:[%s3881_s8 + $0x28] sm:$0xff]  ;;  %v2558_v55 = vld [vmem:[%s3876_s5 + $0x30] sm:$0xff] }
 0x7e6   :  { %2801 = vmatmul.mubr.msk.f32.vlgmr.msra.gmra.mrb[12].mxu1 %vm798_vm4, %v1023_v1  ;;  %v2998_v1 = vpack.c.bf16 %v1353_v0, %v1352_v63  ;;  %v2557_v53 = vld [vmem:[%s3876_s5 + $0x28] sm:$0xff]  ;;  %v3010_v60 = vpack.c.bf16 %v2559_v58, %v2558_v55 }
 0x7e7   :  { %2985 = vmatpush3.bf16.msra.mxu1 %v2982_v38  ;;  %2991 = vmatprep.subr.bf16.mxu0 %v2990_v56 }
 0x7e8   :  { %2987 = vmatprep.subr.bf16.mxu1 %v2986_v40 }
 0x7eb   :  { %2989 = vmatpush3.bf16.msra.mxu1 %v2986_v40 }
 0x8b9   :  { %v2802_v8 = vpop.f32.mrb[12].mxu1 }
 0x8ba   :  { %1116 = vrot.lane.b32.xlu1 %v2802_v8, %s3251_s27  ;;  %v1103_v9 = vpop.f32.mrb[13].mxu1 }
 0x8bb   :  { %1114 = vrot.lane.b32.xlu0 %v1103_v9, %s3251_s27 }
 0x92c   :  { %v1117_v10 = vpop.permute.xlu1 %1116 }
 0x92d   :  { %v1115_v11 = vpop.permute.xlu0 %1114  ;;  %v1121_v14 = vsel %vm714_vm2, %v2788_v32, %v1117_v10 }
 0x92e   :  { %v1120_v12 = vsel %vm714_vm2, %v902_v33, %v1115_v11 }
 0x92f   :  { %2811 = vmatprep.mubr.msk.f32.mxu0 %vm590_vm0, %v1120_v12 }
 0x930   :  { %2812 = vmatmul.mubr.msk.f32.vlgmr.msra.gmra.mrb[8].mxu0 %vm590_vm0, %v1121_v14 }
 0x931   :  { %2993 = vmatpush3.bf16.msra.mxu0 %v2990_v56 }
 0x932   :  { %2995 = vmatprep.subr.bf16.mxu0 %v2994_v62 }
 0x935   :  { %2997 = vmatpush3.bf16.msra.mxu0 %v2994_v62 }
 0x936   :  { %2999 = vmatprep.subr.bf16.mxu0 %v2998_v1 }
 0x939   :  { %3001 = vmatpush3.bf16.msra.mxu0 %v2998_v1 }
 0x93a   :  { %3003 = vmatprep.subr.bf16.mxu0 %v3002_v4 }
 0x93d   :  { %3005 = vmatpush3.bf16.msra.mxu0 %v3002_v4 }
 0xa03   :  { %v2813_v18 = vpop.f32.mrb[8].mxu0 }
 0xa04   :  { %v1208_v19 = vadd.f32 %v2813_v18, %v3490_v15  ;;  %v1198_v20 = vpop.f32.mrb[9].mxu0 }
 0xa05   :  { %v1207_v21 = vadd.f32 %v1198_v20, %v3488_v13 }
 0xa06   :  { %v3617_v22 = vadd.f32 %v1212_v17, %v1208_v19 }
 0xa07   :  { %v3619_v24 = vadd.f32 %v1212_v17, %v1207_v21 }
 0xa08   :  { %v1218_v25 = vsel %vm594_vm1, %v3617_v22, 0.0 }
 0xa09   :  { %1219 = vadd.xlane.f32.xlu0 %v1218_v25  ;;  %v1215_v26 = vsel %vm590_vm0, %v3619_v24, 0.0 }
 0xa0a   :  { %1216 = vadd.xlane.f32.xlu1 %v1215_v26 }
 0xa96   :  { %v1220_v27 = vpop.xlane.xlu0 %1219 }
 0xa97   :  { %v1222_v28 = vmul.f32 0.03125, %v1220_v27  ;;  %v1217_v29 = vpop.xlane.xlu1 %1216 }
 0xa98   :  { %v1221_v30 = vmul.f32 0.03125, %v1217_v29 }
 0xa99   :  { %v1224_v15 = vsub.f32 %v3617_v22, %v1222_v28 }
 0xa9a   :  { %v1223_v13 = vsub.f32 %v3619_v24, %v1221_v30 }
 0xa9b   :  { %v1226_v31 = vmul.f32 %v1224_v15, %v1224_v15 }
 0xa9c   :  { %v1225_v32 = vmul.f32 %v1223_v13, %v1223_v13 }
 0xa9d   :  { %v1230_v33 = vsel %vm594_vm1, %v1226_v31, 0.0 }
 0xa9e   :  { %1231 = vadd.xlane.f32.xlu1 %v1230_v33  ;;  %v1227_v34 = vsel %vm590_vm0, %v1225_v32, 0.0  ;;  %v1442_v33 = vsub.s32 3, %v3514_v45 }
 0xa9f   :  { %1228 = vadd.xlane.f32.xlu0 %v1227_v34 }
 0xaa0   :  { %v1443_v34 = vrot.slane %v3520_v47, %v1442_v33 }
 0xb2b   :  { %v1232_v41 = vpop.xlane.xlu1 %1231 }
 0xb2c   :  { %v1234_v42 = vmul.f32 0.03125, %v1232_v41  ;;  %v1229_v43 = vpop.xlane.xlu0 %1228 }
 0xb2d   :  { %v1233_v44 = vmul.f32 0.03125, %v1229_v43 }
 0xb2e   :  { %v1236_v48 = vadd.f32 1e-12, %v1234_v42 }
 0xb2f   :  { %v1235_v49 = vadd.f32 1e-12, %v1233_v44 }
 0xb30   :  { %3207 = vrsqrt.f32 %v1236_v48 }
 0xb31   :  { %3209 = vrsqrt.f32 %v1235_v49 }
 0xb3a   :  { %v3208_v50 = vpop.eup %3207 }
 0xb3b   :  { %v3210_v51 = vpop.eup %3209  ;;  %v1240_v54 = vmul.f32 %v3208_v50, %v1224_v15 }
 0xb3c   :  { %v1239_v52 = vmul.f32 %v3210_v51, %v1223_v13 }
 0xb3e   :  { %2822 = vmatprep.mubr.msk.f32.mxu1 %vm590_vm0, %v1239_v52 }
 0xb3f   :  { %2823 = vmatmul.mubr.msk.f32.vlgmr.msra.gmra.mrb[14].mxu1 %vm590_vm0, %v1240_v54  ;;  %v2556_v54 = vld [vmem:[%s3876_s5 + $0x20] sm:$0xff] }
 0xb40   :  { %v3006_v56 = vpack.c.bf16 %v2557_v53, %v2556_v54 }
 0xb42   :  { %3007 = vmatprep.subr.bf16.mxu1 %v3006_v56 }
 0xb43   :  { %3009 = vmatpush3.bf16.msra.mxu1 %v3006_v56 }
 0xb44   :  { %3011 = vmatprep.subr.bf16.mxu1 %v3010_v60 }
 0xb47   :  { %3013 = vmatpush3.bf16.msra.mxu1 %v3010_v60 }
 0xc12   :  { %v2824_v7 = vpop.f32.mrb[14].mxu1 }
 0xc13   :  { %v1327_v8 = vadd.f32 %v2824_v7, %v1248_v6  ;;  %v1321_v9 = vpop.f32.mrb[15].mxu1 }
 0xc14   :  { %v1322_v10 = vadd.f32 %v1321_v9, %v1248_v6  ;;  %v3708_v9 = vld [vmem:[%s3877_s9 + $0x4] sm:$0xf] }
 0xc15   :  { %v1331_v11 = vmul.f32 %v1327_v8, %v1327_v8 }
 0xc16   :  { %v1330_v12 = vmul.f32 %v1322_v10, %v1322_v10 }
 0xc17   :  { %v1333_v14 = vmul.f32 %v1331_v11, %v1327_v8 }
 0xc18   :  { %v1332_v17 = vmul.f32 %v1330_v12, %v1322_v10 }
 0xc19   :  { %v1335_v18 = vmul.f32 0.044715, %v1333_v14 }
 0xc1a   :  { %v1334_v19 = vmul.f32 0.044715, %v1332_v17 }
 0xc1b   :  { %v1337_v20 = vadd.f32 %v1335_v18, %v1327_v8 }
 0xc1c   :  { %v1336_v21 = vadd.f32 %v1334_v19, %v1322_v10 }
 0xc1d   :  { %v1339_v25 = vmul.f32 0.7978846, %v1337_v20 }
 0xc1e   :  { %v1338_v26 = vmul.f32 0.7978846, %v1336_v21 }
 0xc1f   :  { %3211 = vtanh.f32 %v1339_v25 }
 0xc20   :  { %3213 = vtanh.f32 %v1338_v26 }
 0xc29   :  { %v3212_v27 = vpop.eup %3211 }
 0xc2a   :  { %v3214_v28 = vpop.eup %3213  ;;  %v1343_v29 = vadd.f32 1.0, %v3212_v27 }
 0xc2b   :  { %v1342_v30 = vadd.f32 1.0, %v3214_v28 }
 0xc2c   :  { %v1345_v15 = vmul.f32 0.5, %v1343_v29 }
 0xc2d   :  { %v1344_v13 = vmul.f32 0.5, %v1342_v30 }
 0xc2e   :  { %v1347_v32 = vmul.f32 %v1345_v15, %v1327_v8 }
 0xc2f   :  { %v1346_v31 = vmul.f32 %v1344_v13, %v1322_v10  ;;  %v1482_v10 = vrot.slane %v3708_v9, %v625_v46 }
 0xc31   :  { %2841 = vmatprep.mubr.msk.f32.mxu0 %vm1356_vm9, %v1346_v31 }
 0xc32   :  { %2842 = vmatmul.mubr.msk.f32.vlgmr.msra.gmra.mrb[10].mxu0 %vm1356_vm9, %v1347_v32 }
 0xd05   :  { %v2843_v35 = vpop.f32.mrb[10].mxu0 }
 0xd06   :  { %v1439_v36 = vadd.f32 %v2843_v35, %v3617_v22  ;;  %v1429_v37 = vpop.f32.mrb[11].mxu0 }
 0xd07   :  { %v1438_v38 = vadd.f32 %v1429_v37, %v3619_v24 }
 0xd08   :  { %v3679_v39 = vadd.f32 %v1443_v34, %v1439_v36 }
 0xd09   :  { %v3681_v40 = vadd.f32 %v1443_v34, %v1438_v38 }
 0xd0a   :  { %v1451_v41 = vsel %vm594_vm1, %v3679_v39, 0.0 }
 0xd0b   :  { %1452 = vadd.xlane.f32.xlu1 %v1451_v41  ;;  %v1448_v42 = vsel %vm590_vm0, %v3681_v40, 0.0 }
 0xd0c   :  { %1449 = vadd.xlane.f32.xlu0 %v1448_v42 }
 0xd98   :  { %v1453_v43 = vpop.xlane.xlu1 %1452 }
 0xd99   :  { %v1455_v47 = vmul.f32 0.03125, %v1453_v43  ;;  %v1450_v44 = vpop.xlane.xlu0 %1449 }
 0xd9a   :  { %v1454_v48 = vmul.f32 0.03125, %v1450_v44 }
 0xd9b   :  { %v1457_v22 = vsub.f32 %v3679_v39, %v1455_v47 }
 0xd9c   :  { %v1456_v24 = vsub.f32 %v3681_v40, %v1454_v48 }
 0xd9d   :  { %v1459_v49 = vmul.f32 %v1457_v22, %v1457_v22 }
 0xd9e   :  { %v1458_v50 = vmul.f32 %v1456_v24, %v1456_v24 }
 0xd9f   :  { %v1463_v51 = vsel %vm594_vm1, %v1459_v49, 0.0 }
 0xda0   :  { %1464 = vadd.xlane.f32.xlu1 %v1463_v51  ;;  %v1460_v52 = vsel %vm590_vm0, %v1458_v50, 0.0 }
 0xda1   :  { %1461 = vadd.xlane.f32.xlu0 %v1460_v52 }
 0xe2d   :  { %v1465_v62 = vpop.xlane.xlu1 %1464 }
 0xe2e   :  { %v1467_v63 = vmul.f32 0.03125, %v1465_v62  ;;  %v1462_v0 = vpop.xlane.xlu0 %1461 }
 0xe2f   :  { %v1466_v1 = vmul.f32 0.03125, %v1462_v0 }
 0xe30   :  { %v1469_v2 = vadd.f32 1e-12, %v1467_v63 }
 0xe31   :  { %v1468_v3 = vadd.f32 1e-12, %v1466_v1 }
 0xe32   :  { %3215 = vrsqrt.f32 %v1469_v2 }
 0xe33   :  { %3217 = vrsqrt.f32 %v1468_v3 }
 0xe3c   :  { %v3216_v4 = vpop.eup %3215 }
 0xe3d   :  { %v3218_v6 = vpop.eup %3217  ;;  %v1473_v8 = vmul.f32 %v3216_v4, %v1457_v22 }
 0xe3e   :  { %v1472_v7 = vmul.f32 %v3218_v6, %v1456_v24 }
 0xe40   :  { %2852 = vmatprep.mubr.msk.f32.mxu1 %vm590_vm0, %v1472_v7 }
 0xe41   :  { %2853 = vmatmul.mubr.msk.f32.vlgmr.msra.gmra.mrb[16].mxu1 %vm590_vm0, %v1473_v8 }
 0xf14   :  { %v2854_v11 = vpop.f32.mrb[16].mxu1 }
 0xf15   :  { %v1561_v12 = vadd.f32 %v2854_v11, %v1482_v10  ;;  %v1555_v14 = vpop.f32.mrb[17].mxu1 }
 0xf16   :  { %v1556_v17 = vadd.f32 %v1555_v14, %v1482_v10 }
 0xf18   :  { %2859 = vmatprep.mubr.msk.f32.mxu1 %vm714_vm2, %v1556_v17  ;;  %v3714_v18 = vpack.i.bf16 %v1561_v12, %v1556_v17 }
 0xf1a   :  { %3116 = vrot.lane.b32.xlu1 %v3714_v18, %s3246_s15  ;;  %3111 = vrot.lane.b32.xlu0 %v3714_v18, %s3245_s14 }
 0xf1e   :  { %1763 = vrot.lane.b32.xlu1 %v1556_v17, %s3247_s16 }
 0xf22   :  { %1765 = vrot.lane.b32.xlu1 %v1561_v12, %s3247_s16 }
 0xf8c   :  { %v3117_v19 = vpop.permute.xlu1 %3116  ;;  %v3112_v46 = vpop.permute.xlu0 %3111 }
 0xf8d   :  { %v3119_v20 = vunpack.i.h.bf16 %v3117_v19  ;;  %v3118_v21 = vunpack.i.l.bf16 %v3117_v19  ;;  %v3114_v25 = vunpack.i.h.bf16 %v3112_v46  ;;  %v3113_v26 = vunpack.i.l.bf16 %v3112_v46 }
 0xf8f   :  { %v3014_v27 = vpack.c.bf16 %v3114_v25, %v3113_v26  ;;  %v3026_v28 = vpack.c.bf16 %v3119_v20, %v3118_v21 }
 0xf90   :  { %v1764_v29 = vpop.permute.xlu1 %1763 }
 0xf91   :  { %3016 = vmatprep.subr.msk.bf16.mxu1 %vm3536_vm3, %v3014_v27 }
 0xf92   :  { %3019 = vmatpush3.bf16.xpose.msk.msra.mxu1 %vm3536_vm3, %v3014_v27  ;;  %v2576_v27 = vld [vmem:[%s3879_s6 + $0x20] sm:$0xff] }
 0xf93   :  { %3028 = vmatprep.subr.msk.bf16.mxu1 %vm3536_vm3, %v3026_v28 }
 0xf94   :  { %v1766_v30 = vpop.permute.xlu1 %1765 }
 0xf99   :  { %2860 = vmatmul.mubr.msk.f32.vlgmr.msra.gmra.mrb[18].mxu1 %vm714_vm2, %v1561_v12 }
 0xf9a   :  { %3031 = vmatpush3.bf16.xpose.msk.msra.mxu1 %vm3536_vm3, %v3026_v28  ;;  %2873 = vmatprep.mubr.msk.f32.mxu1 %vm714_vm2, %v1764_v29  ;;  %v2577_v28 = vld [vmem:[%s3879_s6 + $0x28] sm:$0xff] }
 0xf9b   :  { %v3038_v29 = vpack.c.bf16 %v2577_v28, %v2576_v27  ;;  %v2595_v27 = vld [vmem:[%s3881_s8 + $0x78] sm:$0xff] }
 0xfa1   :  { %2874 = vmatmul.mubr.msk.f32.vlgmr.msra.gmra.mrb[20].mxu1 %vm714_vm2, %v1766_v30  ;;  %v2578_v30 = vld [vmem:[%s3879_s6 + $0x30] sm:$0xff] }
0x106c   :  { %v2861_v15 = vpop.f32.mrb[18].mxu1 }
0x106d   :  { %v1650_v13 = vadd.f32 %v2861_v15, %v3553_v61  ;;  %v1644_v31 = vpop.f32.mrb[19].mxu1  ;;  %v2579_v15 = vld [vmem:[%s3879_s6 + $0x38] sm:$0xff] }
0x106e   :  { %v1645_v32 = vadd.f32 %v1644_v31, %v3548_v59 }
0x106f   :  { %v1656_v34 = vsel %vm802_vm5, %v1650_v13, -inf }
0x1070   :  { %1657 = vmax.xlane.f32.xlu1 %v1656_v34  ;;  %v1653_v35 = vsel %vm798_vm4, %v1645_v32, -inf }
0x1071   :  { %1654 = vmax.xlane.f32.xlu0 %v1653_v35 }
0x1074   :  { %v2875_v36 = vpop.f32.mrb[20].mxu1 }
0x1075   :  { %v1845_v57 = vpop.f32.mrb[21].mxu1  ;;  %v1851_v38 = vadd.f32 %v2875_v36, %v3553_v61 }
0x1076   :  { %v1846_v37 = vadd.f32 %v1845_v57, %v3548_v59 }
0x1077   :  { %v1857_v42 = vsel %vm802_vm5, %v1851_v38, -inf }
0x1078   :  { %v1854_v41 = vsel %vm798_vm4, %v1846_v37, -inf }
0x1079   :  { %1855 = vmax.xlane.f32.xlu0 %v1854_v41  ;;  %v2065_v41 = vrot.slane %v3708_v9, %v1211_v16 }
0x107d   :  { %1858 = vmax.xlane.f32.xlu0 %v1857_v42 }
0x10fd   :  { %v1658_v43 = vpop.xlane.xlu1 %1657 }
0x10fe   :  { %v1660_v47 = vsub.f32 %v1650_v13, %v1658_v43  ;;  %v1655_v44 = vpop.xlane.xlu0 %1654  ;;  %v3042_v13 = vpack.c.bf16 %v2579_v15, %v2578_v30 }
0x10ff   :  { %v1659_v48 = vsub.f32 %v1645_v32, %v1655_v44 }
0x1100   :  { %v1663_v22 = vmul.f32 1.442695, %v1660_v47 }
0x1101   :  { %v1661_v24 = vmul.f32 1.442695, %v1659_v48 }
0x1102   :  { %3219 = vpow2.f32 %v1663_v22 }
0x1103   :  { %3221 = vpow2.f32 %v1661_v24 }
0x1106   :  { %v1856_v49 = vpop.xlane.xlu0 %1855 }
0x1107   :  { %v1860_v50 = vsub.f32 %v1846_v37, %v1856_v49 }
0x1109   :  { %v1862_v51 = vmul.f32 1.442695, %v1860_v50 }
0x110a   :  { %v1859_v59 = vpop.xlane.xlu0 %1858 }
0x110b   :  { %3223 = vpow2.f32 %v1862_v51  ;;  %v1861_v61 = vsub.f32 %v1851_v38, %v1859_v59 }
0x110c   :  { %v3220_v52 = vpop.eup %3219 }
0x110d   :  { %v3222_v54 = vpop.eup %3221  ;;  %v1864_v53 = vmul.f32 1.442695, %v1861_v61  ;;  %v1668_v55 = vsel %vm802_vm5, %v3220_v52, 0.0 }
0x110e   :  { %1669 = vadd.xlane.f32.xlu1 %v1668_v55  ;;  %v1665_v56 = vsel %vm798_vm4, %v3222_v54, 0.0  ;;  %v2582_v55 = vld [vmem:[%s3880_s7 + $0x20] sm:$0xff] }
0x110f   :  { %3225 = vpow2.f32 %v1864_v53  ;;  %1666 = vadd.xlane.f32.xlu0 %v1665_v56  ;;  %v2583_v56 = vld [vmem:[%s3880_s7 + $0x28] sm:$0xff] }
0x1115   :  { %v3224_v58 = vpop.eup %3223 }
0x1116   :  { %v1866_v60 = vsel %vm798_vm4, %v3224_v58, 0.0 }
0x1117   :  { %1867 = vadd.xlane.f32.xlu0 %v1866_v60  ;;  %v3046_v60 = vpack.c.bf16 %v2583_v56, %v2582_v55 }
0x1119   :  { %v3226_v62 = vpop.eup %3225  ;;  %3047 = vmatprep.subr.bf16.mxu1 %v3046_v60 }
0x111a   :  { %v1869_v63 = vsel %vm802_vm5, %v3226_v62, 0.0  ;;  %3049 = vmatpush3.bf16.msra.mxu1 %v3046_v60  ;;  %v2300_v60 = vld [vmem:[%s3882_s4] sm:$0xff] }
0x111b   :  { %1870 = vadd.xlane.f32.xlu1 %v1869_v63 }
0x112c   :  { %3126 = vrot.lane.b32.xlu1 %v3714_v18, %s3250_s21 }
0x112d   :  { %3121 = vrot.lane.b32.xlu0 %v3714_v18, %s3248_s3 }
0x119b   :  { %v1670_v1 = vpop.xlane.xlu1 %1669 }
0x119c   :  { %v1667_v0 = vpop.xlane.xlu0 %1666 }
0x119d   :  { %3227 = vrcp.f32 %v1667_v0 }
0x119e   :  { %3229 = vrcp.f32 %v1670_v1 }
0x11a4   :  { %v1868_v2 = vpop.xlane.xlu0 %1867 }
0x11a5   :  { %3231 = vrcp.f32 %v1868_v2 }
0x11a7   :  { %v3228_v3 = vpop.eup %3227 }
0x11a8   :  { %v1871_v4 = vpop.xlane.xlu1 %1870  ;;  %v3122_v6 = vpop.permute.xlu0 %3121  ;;  %v1673_v7 = vmul.f32 %v3228_v3, %v3222_v54 }
0x11a9   :  { %3233 = vrcp.f32 %v1871_v4  ;;  %v3124_v8 = vunpack.i.h.bf16 %v3122_v6  ;;  %v3123_v10 = vunpack.i.l.bf16 %v3122_v6  ;;  %v3230_v12 = vpop.eup %3229 }
0x11aa   :  { %2866 = vmatprep.mubr.msk.f32.mxu0 %vm798_vm4, %v1673_v7  ;;  %v1674_v46 = vmul.f32 %v3230_v12, %v3220_v52  ;;  %v2588_v12 = vld [vmem:[%s3881_s8 + $0x40] sm:$0xff] }
0x11ab   :  { %v3020_v11 = vpack.c.bf16 %v3124_v8, %v3123_v10 }
0x11ac   :  { %v3127_v14 = vpop.permute.xlu1 %3126 }
0x11ad   :  { %v3129_v17 = vunpack.i.h.bf16 %v3127_v14  ;;  %v3128_v18 = vunpack.i.l.bf16 %v3127_v14  ;;  %3022 = vmatprep.subr.msk.bf16.mxu0 %vm3563_vm8, %v3020_v11  ;;  %v2589_v14 = vld [vmem:[%s3881_s8 + $0x48] sm:$0xff] }
0x11ae   :  { %3025 = vmatpush3.bf16.msk.msra.mxu0 %vm3563_vm8, %v3020_v11 }
0x11af   :  { %v3232_v19 = vpop.eup %3231  ;;  %v3032_v20 = vpack.c.bf16 %v3129_v17, %v3128_v18  ;;  %v3054_v17 = vpack.c.bf16 %v2589_v14, %v2588_v12  ;;  %v2590_v18 = vld [vmem:[%s3881_s8 + $0x50] sm:$0xff]  ;;  %v2600_v14 = vld [vmem:[%s3884_s11] ss:$0 sm:$0xff] }
0x11b0   :  { %v1874_v21 = vmul.f32 %v3232_v19, %v3224_v58  ;;  %v2584_v58 = vld [vmem:[%s3880_s7 + $0x30] sm:$0xff]  ;;  %v2591_v19 = vld [vmem:[%s3881_s8 + $0x58] sm:$0xff] }
0x11b1   :  { %2867 = vmatmul.mubr.msk.f32.vlgmr.msra.gmra.mrb[12].mxu0 %vm798_vm4, %v1674_v46  ;;  %3034 = vmatprep.subr.msk.bf16.mxu0 %vm3563_vm8, %v3032_v20  ;;  %v3058_v46 = vpack.c.bf16 %v2591_v19, %v2590_v18 }
0x11b2   :  { %3037 = vmatpush3.bf16.msk.msra.mxu0 %vm3563_vm8, %v3032_v20  ;;  %2880 = vmatprep.mubr.msk.f32.mxu0 %vm798_vm4, %v1874_v21  ;;  %v2592_v20 = vld [vmem:[%s3881_s8 + $0x60] sm:$0xff]  ;;  %v2593_v21 = vld [vmem:[%s3881_s8 + $0x68] sm:$0xff] }
0x11b3   :  { %v3234_v25 = vpop.eup %3233  ;;  %3039 = vmatprep.subr.bf16.mxu0 %v3038_v29 }
0x11b4   :  { %v1875_v26 = vmul.f32 %v3234_v25, %v3226_v62  ;;  %v2585_v62 = vld [vmem:[%s3880_s7 + $0x38] sm:$0xff]  ;;  %v3062_v25 = vpack.c.bf16 %v2593_v21, %v2592_v20 }
0x11b5   :  { %v3050_v63 = vpack.c.bf16 %v2585_v62, %v2584_v58 }
0x11b6   :  { %2881 = vmatmul.mubr.msk.f32.vlgmr.msra.gmra.mrb[14].mxu0 %vm798_vm4, %v1875_v26  ;;  %v2594_v26 = vld [vmem:[%s3881_s8 + $0x70] sm:$0xff] }
0x11b7   :  { %3041 = vmatpush3.bf16.msra.mxu0 %v3038_v29  ;;  %3051 = vmatprep.subr.bf16.mxu1 %v3050_v63  ;;  %v3066_v28 = vpack.c.bf16 %v2595_v27, %v2594_v26  ;;  %v2102_v29 = vrot.slane %v3708_v9, %v1247_v5 }
0x11b8   :  { %3043 = vmatprep.subr.bf16.mxu0 %v3042_v13  ;;  %3053 = vmatpush3.bf16.msra.mxu1 %v3050_v63 }
0x11bb   :  { %3045 = vmatpush3.bf16.msra.mxu0 %v3042_v13 }
0x11bc   :  { %3055 = vmatprep.subr.bf16.mxu0 %v3054_v17 }
0x1284   :  { %v2868_v31 = vpop.f32.mrb[12].mxu0 }
0x1285   :  { %v1754_v32 = vpop.f32.mrb[13].mxu0 }
0x1289   :  { %v2882_v34 = vpop.f32.mrb[14].mxu0 }
0x128a   :  { %v1955_v35 = vpop.f32.mrb[15].mxu0 }
0x128b   :  { %1966 = vrot.lane.b32.xlu1 %v1955_v35, %s3251_s27 }
0x128f   :  { %1968 = vrot.lane.b32.xlu1 %v2882_v34, %s3251_s27 }
0x12fd   :  { %v1967_v36 = vpop.permute.xlu1 %1966 }
0x12fe   :  { %v1972_v57 = vsel %vm714_vm2, %v1754_v32, %v1967_v36 }
0x12ff   :  { %2891 = vmatprep.mubr.msk.f32.mxu0 %vm590_vm0, %v1972_v57 }
0x1301   :  { %v1969_v37 = vpop.permute.xlu1 %1968 }
0x1302   :  { %v1973_v38 = vsel %vm714_vm2, %v2868_v31, %v1969_v37 }
0x1303   :  { %2892 = vmatmul.mubr.msk.f32.vlgmr.msra.gmra.mrb[16].mxu0 %vm590_vm0, %v1973_v38 }
0x1304   :  { %3057 = vmatpush3.bf16.msra.mxu0 %v3054_v17 }
0x1305   :  { %3059 = vmatprep.subr.bf16.mxu0 %v3058_v46 }
0x1308   :  { %3061 = vmatpush3.bf16.msra.mxu0 %v3058_v46 }
0x1309   :  { %3063 = vmatprep.subr.bf16.mxu0 %v3062_v25 }
0x130c   :  { %3065 = vmatpush3.bf16.msra.mxu0 %v3062_v25 }
0x130d   :  { %3067 = vmatprep.subr.bf16.mxu0 %v3066_v28 }
0x1310   :  { %3069 = vmatpush3.bf16.msra.mxu0 %v3066_v28 }
0x13d6   :  { %v2893_v42 = vpop.f32.mrb[16].mxu0 }
0x13d7   :  { %v2061_v43 = vadd.f32 %v2893_v42, %v3679_v39  ;;  %v2051_v47 = vpop.f32.mrb[17].mxu0 }
0x13d8   :  { %v2060_v44 = vadd.f32 %v2051_v47, %v3681_v40 }
0x13d9   :  { %v3784_v48 = vadd.f32 %v2065_v41, %v2061_v43 }
0x13da   :  { %v3786_v22 = vadd.f32 %v2065_v41, %v2060_v44 }
0x13db   :  { %v2071_v24 = vsel %vm594_vm1, %v3784_v48, 0.0 }
0x13dc   :  { %2072 = vadd.xlane.f32.xlu1 %v2071_v24  ;;  %v2068_v49 = vsel %vm590_vm0, %v3786_v22, 0.0 }
0x13dd   :  { %2069 = vadd.xlane.f32.xlu0 %v2068_v49 }
0x1469   :  { %v2073_v50 = vpop.xlane.xlu1 %2072 }
0x146a   :  { %v2075_v16 = vmul.f32 0.03125, %v2073_v50  ;;  %v2070_v51 = vpop.xlane.xlu0 %2069 }
0x146b   :  { %v2074_v59 = vmul.f32 0.03125, %v2070_v51 }
0x146c   :  { %v2077_v39 = vsub.f32 %v3784_v48, %v2075_v16 }
0x146d   :  { %v2076_v40 = vsub.f32 %v3786_v22, %v2074_v59  ;;  %v3252_v59 = vmov 0.0|0.0  }
0x146e   :  { %v2079_v54 = vmul.f32 %v2077_v39, %v2077_v39  ;;  %3070 = vmatprep.subr.bf16.mxu1 %v3252_v59 }
0x146f   :  { %v2078_v61 = vmul.f32 %v2076_v40, %v2076_v40 }
0x1470   :  { %v2083_v53 = vsel %vm594_vm1, %v2079_v54, 0.0 }
0x1471   :  { %v2080_v52 = vsel %vm590_vm0, %v2078_v61, 0.0 }
0x1472   :  { %2081 = vadd.xlane.f32.xlu0 %v2080_v52 }
0x1476   :  { %2084 = vadd.xlane.f32.xlu0 %v2083_v53 }
0x14ff   :  { %v2082_v0 = vpop.xlane.xlu0 %2081 }
0x1500   :  { %v2086_v1 = vmul.f32 0.03125, %v2082_v0  ;;  %v2390_v0 = vld [vmem:[%s3883_s10] sm:$0xff] }
0x1502   :  { %v2088_v2 = vadd.f32 1e-12, %v2086_v1  ;;  %v2391_v1 = vld [vmem:[%s3883_s10 + $0x8] sm:$0xff] }
0x1503   :  { %v2085_v3 = vpop.xlane.xlu0 %2084 }
0x1504   :  { %3235 = vrsqrt.f32 %v2088_v2  ;;  %v2087_v4 = vmul.f32 0.03125, %v2085_v3  ;;  %v3075_v2 = vpack.c.bf16 %v2391_v1, %v2390_v0  ;;  %v2392_v3 = vld [vmem:[%s3883_s10 + $0x10] sm:$0xff] }
0x1506   :  { %v2089_v6 = vadd.f32 1e-12, %v2087_v4  ;;  %v2393_v4 = vld [vmem:[%s3883_s10 + $0x18] sm:$0xff] }
0x1508   :  { %3237 = vrsqrt.f32 %v2089_v6  ;;  %v3078_v6 = vpack.c.bf16 %v2393_v4, %v2392_v3 }
0x150e   :  { %v3236_v7 = vpop.eup %3235 }
0x150f   :  { %v2092_v8 = vmul.f32 %v3236_v7, %v2076_v40  ;;  %v2297_v40 = vrot.slane %v3708_v9, %v1442_v33 }
0x1511   :  { %2902 = vmatprep.mubr.msk.f32.mxu1 %vm590_vm0, %v2092_v8 }
0x1512   :  { %v3238_v10 = vpop.eup %3237 }
0x1513   :  { %v2093_v11 = vmul.f32 %v3238_v10, %v2077_v39  ;;  %v3254_v39 = vmov 0.0  }
0x1515   :  { %2903 = vmatmul.mubr.msk.f32.vlgmr.msra.gmra.mrb[22].mxu1 %vm590_vm0, %v2093_v11 }
0x1516   :  { %2928 = vmatprep.mubr.msk.f32.mxu1 %vm3253_vm10, %v3254_v39 }
0x15e8   :  { %v2904_v30 = vpop.f32.mrb[22].mxu1 }
0x15e9   :  { %v2181_v15 = vadd.f32 %v2904_v30, %v2102_v29  ;;  %v2175_v13 = vpop.f32.mrb[23].mxu1 }
0x15ea   :  { %v2176_v31 = vadd.f32 %v2175_v13, %v2102_v29 }
0x15eb   :  { %v2185_v32 = vmul.f32 %v2181_v15, %v2181_v15 }
0x15ec   :  { %v2184_v34 = vmul.f32 %v2176_v31, %v2176_v31 }
0x15ed   :  { %v2187_v35 = vmul.f32 %v2185_v32, %v2181_v15 }
0x15ee   :  { %v2186_v36 = vmul.f32 %v2184_v34, %v2176_v31 }
0x15ef   :  { %v2189_v57 = vmul.f32 0.044715, %v2187_v35 }
0x15f0   :  { %v2188_v37 = vmul.f32 0.044715, %v2186_v36 }
0x15f1   :  { %v2191_v38 = vadd.f32 %v2189_v57, %v2181_v15 }
0x15f2   :  { %v2190_v41 = vadd.f32 %v2188_v37, %v2176_v31 }
0x15f3   :  { %v2193_v42 = vmul.f32 0.7978846, %v2191_v38 }
0x15f4   :  { %v2192_v43 = vmul.f32 0.7978846, %v2190_v41 }
0x15f5   :  { %3239 = vtanh.f32 %v2193_v42 }
0x15f6   :  { %3241 = vtanh.f32 %v2192_v43 }
0x15ff   :  { %v3240_v47 = vpop.eup %3239 }
0x1600   :  { %v3242_v44 = vpop.eup %3241  ;;  %v2197_v24 = vadd.f32 1.0, %v3240_v47 }
0x1601   :  { %v2196_v5 = vadd.f32 1.0, %v3242_v44 }
0x1602   :  { %v2199_v49 = vmul.f32 0.5, %v2197_v24 }
0x1603   :  { %v2198_v50 = vmul.f32 0.5, %v2196_v5 }
0x1604   :  { %v2201_v51 = vmul.f32 %v2199_v49, %v2181_v15 }
0x1605   :  { %v2200_v16 = vmul.f32 %v2198_v50, %v2176_v31 }
0x1607   :  { %2921 = vmatprep.mubr.msk.f32.mxu0 %vm1356_vm9, %v2200_v16 }
0x1608   :  { %2922 = vmatmul.mubr.msk.f32.vlgmr.msra.gmra.mrb[18].mxu0 %vm1356_vm9, %v2201_v51 }
0x16db   :  { %v2923_v61 = vpop.f32.mrb[18].mxu0 }
0x16dc   :  { %v2293_v52 = vadd.f32 %v2923_v61, %v3784_v48  ;;  %v2283_v54 = vpop.f32.mrb[19].mxu0 }
0x16dd   :  { %v2292_v53 = vadd.f32 %v2283_v54, %v3786_v22 }
0x16de   :  { %v2299_v55 = vadd.f32 %v2297_v40, %v2293_v52 }
0x16df   :  { %v2298_v56 = vadd.f32 %v2297_v40, %v2292_v53 }
0x16e1   :  { %v3071_v58 = vpack.c.bf16 %v2299_v55, %v2298_v56 }
0x16e3   :  { %3073 = vmatpush3.bf16.msk.msra.mxu1 %vm3563_vm8, %v3071_v58 }
0x16e4   :  { %3074 = vmatprep.subr.bf16.mxu1 %v3252_v59 }
0x16e6   :  { %2929 = vmatmul.mubr.msk.f32.vlgmr.msra.gmra.mrb[24].mxu1 %vm798_vm4, %v2300_v60 }
0x16e7   :  { %2939 = vmatprep.mubr.msk.f32.mxu1 %vm3253_vm10, %v3254_v39  ;;  %3076 = vmatpush3.bf16.msra.mxu1 %v3075_v2 }
0x16e8   :  { %3077 = vmatprep.subr.bf16.mxu1 %v3252_v59 }
0x16eb   :  { %3079 = vmatpush3.bf16.msra.mxu1 %v3078_v6 }
0x17b9   :  { %v2373_v45 = vpop.f32.mrb[24].mxu1 }
0x17ba   :  { %v2930_v33 = vpop.f32.mrb[25].mxu1  ;;  %v2377_v9 = vsel %vm590_vm0, %v2373_v45, 0.0 }
0x17bb   :  { %2378 = vadd.xlane.f32.xlu0 %v2377_v9 }
0x1848   :  { %v2379_v48 = vpop.xlane.xlu0 %2378 }
0x1849   :  { %v2380_v22 = vmul.f32 0.03125, %v2379_v48 }
0x184b   :  { %v2381_v62 = vsub.f32 %v2373_v45, %v2380_v22 }
0x184d   :  { %v2382_v63 = vmul.f32 %v2381_v62, %v2381_v62 }
0x184f   :  { %v2383_v23 = vsel %vm590_vm0, %v2382_v63, 0.0 }
0x1850   :  { %2384 = vadd.xlane.f32.xlu1 %v2383_v23 }
0x18dd   :  { %v2385_v7 = vpop.xlane.xlu1 %2384 }
0x18de   :  { %v2386_v8 = vmul.f32 0.03125, %v2385_v7 }
0x18e0   :  { %v2387_v10 = vadd.f32 1e-12, %v2386_v8 }
0x18e2   :  { %3243 = vrsqrt.f32 %v2387_v10 }
0x18ec   :  { %v3244_v11 = vpop.eup %3243 }
0x18ed   :  { %v2389_v12 = vmul.f32 %v3244_v11, %v2381_v62 }
0x18ef   :  { %2940 = vmatmul.mubr.msk.f32.vlgmr.msra.gmra.mrb[26].mxu1 %vm590_vm0, %v2389_v12 }
0x19c2   :  { %v2470_v17 = vpop.f32.mrb[26].mxu1 }
0x19c3   :  { %v2471_v18 = vadd.f32 %v2600_v14, %v2470_v17  ;;  %v2941_v19 = vpop.f32.mrb[27].mxu1 }
0x19c5   :  { %2474 = vst [vmem:[%s3885_s12] sm:$0xff] %v2471_v18 }

</bundles_post_ra>
